<compile_context>
chip_gen: v5e
topology: v5e:2x2
jax: 0.10.0
libtpu: 0.0.40
codegen_flags: <defaults>
</compile_context>

<pallas_src>
import jax
import jax.numpy as jnp
from jax.experimental import pallas as pl
from jax.experimental.pallas import tpu as pltpu

NEG_SLOPE = 0.01   # torch.nn.LeakyReLU default
EPS = 1e-5         # torch.nn.BatchNorm2d default

_TAPS = tuple((dy, dx) for dy in range(3) for dx in range(3))


def _round_up(x, m):
    return ((x + m - 1) // m) * m


def _leaky(x):
    return jnp.where(x >= 0, x, NEG_SLOPE * x)


# ---------------------------------------------------------------------------
# Fused Pallas kernel (one batch image per grid step)
# ---------------------------------------------------------------------------
def _make_resblock_kernel(use_im2col, stride, Ho, Wo, Wph, Cin, scr_rows):
    s = stride
    Hph = Ho + 3                      # rows per stage-1 phase (incl. bottom slack rows)
    phase_sz = Hph * Wph              # flat rows per phase of the phase-layout input
    M1 = Ho * Wph                     # flat output rows (incl. Wph-Wo masked "garbage" cols)
    halo = Wph + 1                    # top halo rows; multiple of 8 by construction
    bot_start = (halo + M1) // 8 * 8  # 8-aligned start of the bottom halo zero
    bot_rows = scr_rows - bot_start   # multiple of 8; overlap with interior is overwritten after

    def tap_base(dy, dx):
        # flat offset of 3x3 tap (dy, dx) inside the phase-decomposed padded input
        return ((dy % s) * s + (dx % s)) * phase_sz + (dy // s) * Wph + (dx // s)

    def kernel(x_ref, w1_ref, b1_ref, w2_ref, b2_ref, wc_ref, bc_ref, mask_ref,
               o_ref, o1p_ref):
        # ---- stage 1: conv1 (+folded BN1) -> LeakyReLU (Dropout = identity, eval) ----
        if use_im2col:
            # single K = 9*Cin matmul on the channel-axis im2col operand
            acc = jnp.dot(x_ref[...], w1_ref[...], preferred_element_type=jnp.float32)
        else:
            acc = None
            for t, (dy, dx) in enumerate(_TAPS):
                xt = x_ref[pl.ds(tap_base(dy, dx), M1), :]          # bf16, no cast
                part = jnp.dot(xt, w1_ref[t], preferred_element_type=jnp.float32)
                acc = part if acc is None else acc + part
        # zero garbage columns of the flat (Ho, Wph) layout (they act as conv padding)
        y1 = _leaky(acc + b1_ref[...]) * mask_ref[...]

        # ---- stash o1 into the bf16 VMEM scratch: zero only the halo rows -------------
        zc = o1p_ref.shape[1]
        o1p_ref[pl.ds(0, halo), :] = jnp.zeros((halo, zc), o1p_ref.dtype)
        o1p_ref[pl.ds(bot_start, bot_rows), :] = jnp.zeros((bot_rows, zc), o1p_ref.dtype)
        o1p_ref[pl.ds(halo, M1), :] = y1.astype(o1p_ref.dtype)      # interior (overwrites overlap)

        # ---- stage 2 main path: conv2 (+folded BN2) -----------------------------------
        acc2 = None
        for t, (dy, dx) in enumerate(_TAPS):
            o1t = o1p_ref[pl.ds(dy * Wph + dx, M1), :]              # bf16, no cast
            part = jnp.dot(o1t, w2_ref[t], preferred_element_type=jnp.float32)
            acc2 = part if acc2 is None else acc2 + part
        main = acc2 + b2_ref[...]

        # ---- shortcut: BN(x) -> 1x1 stride-s conv (BN folded into wc / bc) ------------
        if use_im2col:
            xc = x_ref[...]               # wc is zero except at the centre-tap rows
        else:
            xc = x_ref[pl.ds(tap_base(1, 1), M1), :]   # strided 1x1 conv = centre tap
        sc = jnp.dot(xc, wc_ref[...], preferred_element_type=jnp.float32) + bc_ref[...]

        # ---- residual add + LeakyReLU --------------------------------------------------
        o_ref[...] = _leaky(main + sc).astype(o_ref.dtype)

    return kernel


# ---------------------------------------------------------------------------
# JAX wrapper: layout plumbing + BN/bias folding + pallas_call
# ---------------------------------------------------------------------------
def _bn_fold(gamma, beta, mean, var):
    scale = gamma * jax.lax.rsqrt(var + EPS)
    shift = beta - mean * scale
    return scale, shift


def res_block_forward(x_nchw, p, stride):
    s = int(stride)
    x = jnp.transpose(x_nchw, (0, 2, 3, 1)).astype(jnp.bfloat16)      # NHWC, bf16 in HBM
    N, H, W, Cin = x.shape
    Cout = p["w1"].shape[0]

    Ho = (H - 1) // s + 1
    Wo = (W - 1) // s + 1
    # flat spatial width with >=2 padding/garbage columns, chosen so (Wph+1) % 8 == 0
    Wph = _round_up(Wo + 3, 8) - 1
    Hph = Ho + 3
    # TODO(synk): Cp=128 padding wastes bandwidth/FLOPs for very small Cout (e.g. 8);
    # this kernel is tuned for Cout >= 128.
    Cp = _round_up(max(Cout, 128), 128)
    M1 = Ho * Wph
    pc = Cp - Cout
    use_im2col = Cin <= 32            # small-Cin: merge taps so K = 9*Cin

    # --- fold BN (eval running stats) + conv bias into weights --------------------------
    s1, t1 = _bn_fold(p["g1"], p["be1"], p["m1"], p["v1"])
    s2, t2 = _bn_fold(p["g2"], p["be2"], p["m2"], p["v2"])
    sb, tb = _bn_fold(p["gb"], p["bb"], p["mb"], p["vb"])

    w2 = jnp.transpose(p["w2"], (2, 3, 1, 0)).reshape(9, Cout, Cout) * s2
    w2 = jnp.pad(w2, ((0, 0), (0, pc), (0, pc))).astype(jnp.bfloat16)
    b1 = jnp.pad(p["b1"] * s1 + t1, (0, pc))[None, :].astype(jnp.float32)
    b2 = jnp.pad(p["b2"] * s2 + t2, (0, pc))[None, :].astype(jnp.float32)
    wc0 = p["wc"].reshape(Cout, Cin).T                                # [Cin, Cout]
    wc_f = wc0 * sb[:, None]
    bc = jnp.pad(tb @ wc0 + p["bc"], (0, pc))[None, :].astype(jnp.float32)

    # precomputed garbage-column mask (replaces per-step iota/mod/select)
    mask = ((jnp.arange(M1) % Wph) < Wo).astype(jnp.float32)[:, None]  # (M1, 1)

    if use_im2col:
        # --- channel-axis im2col: one K = 9*Cin stage-1 matmul --------------------------
        Kc = 9 * Cin
        pad_b = max(0, (Ho - 1) * s + 2 - H)
        pad_r = max(0, (Wph - 1) * s + 2 - W)
        xpad = jnp.pad(x, ((0, 0), (1, pad_b), (1, pad_r), (0, 0)))
        taps = [xpad[:, dy:dy + (Ho - 1) * s + 1:s, dx:dx + (Wph - 1) * s + 1:s, :]
                for dy in range(3) for dx in range(3)]
        x_in = jnp.stack(taps, axis=3).reshape(N, M1, Kc)             # bf16 (N, M1, 9*Cin)

        w1 = jnp.transpose(p["w1"], (2, 3, 1, 0)).reshape(Kc, Cout) * s1
        w1 = jnp.pad(w1, ((0, 0), (0, pc))).astype(jnp.bfloat16)
        # shortcut 1x1 strided conv == centre tap (dy=1,dx=1) of the im2col operand
        wc = jnp.zeros((Kc, Cout), jnp.float32).at[4 * Cin:5 * Cin, :].set(wc_f)
        wc = jnp.pad(wc, ((0, 0), (0, pc))).astype(jnp.bfloat16)

        x_spec = pl.BlockSpec((None, M1, Kc), lambda n: (n, 0, 0))
        w1_spec = pl.BlockSpec((Kc, Cp), lambda n: (0, 0))
        wc_spec = pl.BlockSpec((Kc, Cp), lambda n: (0, 0))
        in_bytes = M1 * Kc * 2
        w_bytes = 2 * Kc * Cp * 2 + 9 * Cp * Cp * 2
    else:
        # --- space-to-depth ("phase") layout of the zero-padded input (no 9x im2col) ----
        Lx = s * s * Hph * Wph
        xpad = jnp.pad(x, ((0, 0), (1, s * Hph - H - 1), (1, s * Wph - W - 1), (0, 0)))
        x_in = xpad.reshape(N, Hph, s, Wph, s, Cin).transpose(0, 2, 4, 1, 3, 5)
        x_in = x_in.reshape(N, Lx, Cin)                               # bf16 (N, Lx, Cin)

        w1 = jnp.transpose(p["w1"], (2, 3, 1, 0)).reshape(9, Cin, Cout) * s1
        w1 = jnp.pad(w1, ((0, 0), (0, 0), (0, pc))).astype(jnp.bfloat16)
        wc = jnp.pad(wc_f, ((0, 0), (0, pc))).astype(jnp.bfloat16)

        x_spec = pl.BlockSpec((None, Lx, Cin), lambda n: (n, 0, 0))
        w1_spec = pl.BlockSpec((9, Cin, Cp), lambda n: (0, 0, 0))
        wc_spec = pl.BlockSpec((Cin, Cp), lambda n: (0, 0))
        in_bytes = Lx * Cin * 2
        w_bytes = (9 * Cin * Cp + Cin * Cp + 9 * Cp * Cp) * 2

    scr_rows = _round_up(M1 + 2 * (Wph + 1), 8)
    kernel = _make_resblock_kernel(use_im2col, s, Ho, Wo, Wph, Cin, scr_rows)

    # per-step VMEM estimate (double-buffered input/output/weights + scratch)
    est = (2 * (in_bytes + M1 * Cp * 2)
           + 2 * (w_bytes + 3 * Cp * 4 + M1 * 4)
           + scr_rows * Cp * 2)
    vmem_limit = int(min(max(2 * est, 32 * 1024 * 1024), 100 * 1024 * 1024))

    out = pl.pallas_call(
        kernel,
        out_shape=jax.ShapeDtypeStruct((N, M1, Cp), jnp.bfloat16),    # bf16 output HBM write
        grid_spec=pltpu.PrefetchScalarGridSpec(
            num_scalar_prefetch=0,
            grid=(N,),
            in_specs=[
                x_spec,                                               # input operand
                w1_spec,                                              # folded conv1
                pl.BlockSpec((1, Cp), lambda n: (0, 0)),              # folded bias1
                pl.BlockSpec((9, Cp, Cp), lambda n: (0, 0, 0)),       # folded conv2 taps
                pl.BlockSpec((1, Cp), lambda n: (0, 0)),              # folded bias2
                wc_spec,                                              # folded shortcut conv
                pl.BlockSpec((1, Cp), lambda n: (0, 0)),              # folded shortcut bias
                pl.BlockSpec((M1, 1), lambda n: (0, 0)),              # garbage-column mask
            ],
            out_specs=pl.BlockSpec((None, M1, Cp), lambda n: (n, 0, 0)),
            scratch_shapes=[pltpu.VMEM((scr_rows, Cp), jnp.bfloat16)],
        ),
        compiler_params=pltpu.CompilerParams(
            dimension_semantics=("parallel",),
            vmem_limit_bytes=vmem_limit,
        ),
    )(x_in, w1, b1, w2, b2, wc, bc, mask)

    out = out.reshape(N, Ho, Wph, Cp)[:, :, :Wo, :Cout]
    return jnp.transpose(out, (0, 3, 1, 2)).astype(jnp.float32)       # back to NCHW, f32


# ---------------------------------------------------------------------------
# Pure-JAX reference (for correctness check)
# ---------------------------------------------------------------------------
def res_block_reference(x_nchw, p, stride):
    def conv(xh, w_oihw, b, s, pad):
        y = jax.lax.conv_general_dilated(
            xh, jnp.transpose(w_oihw, (2, 3, 1, 0)),
            window_strides=(s, s), padding=pad,
            dimension_numbers=("NHWC", "HWIO", "NHWC"))
        return y + b

    def bn(xh, g, be, m, v):
        return (xh - m) * jax.lax.rsqrt(v + EPS) * g + be

    xh = jnp.transpose(x_nchw, (0, 2, 3, 1)).astype(jnp.float32)
    o = conv(xh, p["w1"], p["b1"], stride, ((1, 1), (1, 1)))
    o = bn(o, p["g1"], p["be1"], p["m1"], p["v1"])
    o = _leaky(o)
    o = conv(o, p["w2"], p["b2"], 1, ((1, 1), (1, 1)))
    o = bn(o, p["g2"], p["be2"], p["m2"], p["v2"])
    sc = bn(xh, p["gb"], p["bb"], p["mb"], p["vb"])
    sc = conv(sc, p["wc"], p["bc"], stride, ((0, 0), (0, 0)))
    o = _leaky(o + sc)
    return jnp.transpose(o, (0, 3, 1, 2))


# ---------------------------------------------------------------------------
def make_params(key, in_channels, out_channels):
    ks = jax.random.split(key, 12)

    def n(k, shape, s=0.1):
        return s * jax.random.normal(k, shape, dtype=jnp.float32)

    return {
        "w1": n(ks[0], (out_channels, in_channels, 3, 3)),
        "b1": n(ks[1], (out_channels,)),
        "g1": 1.0 + n(ks[2], (out_channels,)),
        "be1": n(ks[2], (out_channels,)),
        "m1": n(ks[3], (out_channels,)),
        "v1": 0.5 + jnp.abs(n(ks[3], (out_channels,))),
        "w2": n(ks[4], (out_channels, out_channels, 3, 3)),
        "b2": n(ks[5], (out_channels,)),
        "g2": 1.0 + n(ks[6], (out_channels,)),
        "be2": n(ks[6], (out_channels,)),
        "m2": n(ks[7], (out_channels,)),
        "v2": 0.5 + jnp.abs(n(ks[7], (out_channels,))),
        "gb": 1.0 + n(ks[8], (in_channels,)),
        "bb": n(ks[8], (in_channels,)),
        "mb": n(ks[9], (in_channels,)),
        "vb": 0.5 + jnp.abs(n(ks[9], (in_channels,))),
        "wc": n(ks[10], (out_channels, in_channels, 1, 1)),
        "bc": n(ks[11], (out_channels,)),
    }


if __name__ == "__main__":
    key = jax.random.PRNGKey(0)
    kx, kp = jax.random.split(key)

    N, Cin, H, W = 2, 4, 16, 16
    Cout, stride = 8, 2

    x = jax.random.normal(kx, (N, Cin, H, W), dtype=jnp.float32)
    params = make_params(kp, Cin, Cout)

    out = jax.jit(res_block_forward, static_argnums=2)(x, params, stride)
    out = jax.block_until_ready(out)

    ref = jax.block_until_ready(res_block_reference(x, params, stride))
    assert out.shape == (N, Cout, H // stride, W // stride), out.shape
    # bf16 activations/weights/intermediate (f32 accumulation) -> relaxed tolerance vs f32 ref
    assert jnp.allclose(out, ref, atol=5e-2, rtol=5e-2), float(jnp.max(jnp.abs(out - ref)))

    print("KERNEL_OK")
</pallas_src>

<mosaic_0001>
module attributes {stable_mosaic.version = 11 : i64} {
  func.func @kernel(%arg0: i32, %arg1: memref<1x120x36xbf16, #tpu.memory_space<vmem>>, %arg2: memref<36x128xbf16, #tpu.memory_space<vmem>>, %arg3: memref<1x128xf32, #tpu.memory_space<vmem>>, %arg4: memref<9x128x128xbf16, #tpu.memory_space<vmem>>, %arg5: memref<1x128xf32, #tpu.memory_space<vmem>>, %arg6: memref<36x128xbf16, #tpu.memory_space<vmem>>, %arg7: memref<1x128xf32, #tpu.memory_space<vmem>>, %arg8: memref<120x1xf32, #tpu.memory_space<vmem>>, %arg9: memref<1x120x128xbf16, #tpu.memory_space<vmem>>, %arg10: memref<152x128xbf16, #tpu.memory_space<vmem>>) attributes {dimension_semantics = [#tpu.dimension_semantics<parallel>], iteration_bounds = array<i64: 2>, scalar_prefetch = 0 : i64, scratch_operands = 1 : i64, tpu.core_type = #tpu.core_type<tc>, window_params = [{transform_indices = @transform_0, window_bounds = array<i64: 1, 120, 36>}, {pipeline_mode = #tpu.pipeline_mode<synchronous>, transform_indices = @transform_1, window_bounds = array<i64: 36, 128>}, {pipeline_mode = #tpu.pipeline_mode<synchronous>, transform_indices = @transform_2, window_bounds = array<i64: 1, 128>}, {pipeline_mode = #tpu.pipeline_mode<synchronous>, transform_indices = @transform_3, window_bounds = array<i64: 9, 128, 128>}, {pipeline_mode = #tpu.pipeline_mode<synchronous>, transform_indices = @transform_4, window_bounds = array<i64: 1, 128>}, {pipeline_mode = #tpu.pipeline_mode<synchronous>, transform_indices = @transform_5, window_bounds = array<i64: 36, 128>}, {pipeline_mode = #tpu.pipeline_mode<synchronous>, transform_indices = @transform_6, window_bounds = array<i64: 1, 128>}, {pipeline_mode = #tpu.pipeline_mode<synchronous>, transform_indices = @transform_7, window_bounds = array<i64: 120, 1>}, {transform_indices = @transform_8, window_bounds = array<i64: 1, 120, 128>}]} {
    %c0 = arith.constant 0 : index
    %c0_0 = arith.constant 0 : index
    %c0_1 = arith.constant 0 : index
    %0 = vector.load %arg1[%c0, %c0_0, %c0_1] : memref<1x120x36xbf16, #tpu.memory_space<vmem>>, vector<1x120x36xbf16>
    %1 = vector.shape_cast %0 : vector<1x120x36xbf16> to vector<120x36xbf16>
    %c0_2 = arith.constant 0 : index
    %c0_3 = arith.constant 0 : index
    %2 = vector.load %arg2[%c0_2, %c0_3] : memref<36x128xbf16, #tpu.memory_space<vmem>>, vector<36x128xbf16>
    %cst = arith.constant dense<0.000000e+00> : vector<120x128xf32>
    %3 = tpu.matmul %1, %2, %cst {dimension_numbers = #tpu.dot_dimension_numbers<[1], [0], [0], [1], [0, 0, 1, 1], [], []>} : vector<120x36xbf16>, vector<36x128xbf16>, vector<120x128xf32> -> vector<120x128xf32>
    %c0_4 = arith.constant 0 : index
    %c0_5 = arith.constant 0 : index
    %4 = vector.load %arg3[%c0_4, %c0_5] : memref<1x128xf32, #tpu.memory_space<vmem>>, vector<1x128xf32>
    %5 = vector.broadcast %4 : vector<1x128xf32> to vector<120x128xf32>
    %6 = arith.addf %3, %5 : vector<120x128xf32>
    %cst_6 = arith.constant 0.000000e+00 : f32
    %7 = vector.broadcast %cst_6 : f32 to vector<120x128xf32>
    %8 = arith.cmpf oge, %6, %7 : vector<120x128xf32>
    %cst_7 = arith.constant 0.00999999977 : f32
    %9 = vector.broadcast %cst_7 : f32 to vector<120x128xf32>
    %10 = arith.mulf %9, %6 : vector<120x128xf32>
    %11 = arith.select %8, %6, %10 : vector<120x128xi1>, vector<120x128xf32>
    %c0_8 = arith.constant 0 : index
    %c0_9 = arith.constant 0 : index
    %12 = vector.load %arg8[%c0_8, %c0_9] : memref<120x1xf32, #tpu.memory_space<vmem>>, vector<120x1xf32>
    %13 = vector.broadcast %12 : vector<120x1xf32> to vector<120x128xf32>
    %14 = arith.mulf %11, %13 : vector<120x128xf32>
    %cst_10 = arith.constant 0.000000e+00 : bf16
    %15 = vector.broadcast %cst_10 : bf16 to vector<16x128xbf16>
    %c0_11 = arith.constant 0 : index
    %c0_12 = arith.constant 0 : index
    %16 = vector.load %arg10[%c0_11, %c0_12] : memref<152x128xbf16, #tpu.memory_space<vmem>>, vector<16x128xbf16>
    tpu.vector_store %arg10[%c0_11, %c0_12], %15 {strides = array<i32>} : memref<152x128xbf16, #tpu.memory_space<vmem>>, vector<16x128xbf16>,
    %cst_13 = arith.constant 0.000000e+00 : bf16
    %17 = vector.broadcast %cst_13 : bf16 to vector<16x128xbf16>
    %c136 = arith.constant 136 : index
    %c0_14 = arith.constant 0 : index
    %18 = vector.load %arg10[%c136, %c0_14] : memref<152x128xbf16, #tpu.memory_space<vmem>>, vector<16x128xbf16>
    tpu.vector_store %arg10[%c136, %c0_14], %17 {strides = array<i32>} : memref<152x128xbf16, #tpu.memory_space<vmem>>, vector<16x128xbf16>,
    %19 = arith.truncf %14 : vector<120x128xf32> to vector<120x128xbf16>
    %c16 = arith.constant 16 : index
    %c0_15 = arith.constant 0 : index
    %20 = vector.load %arg10[%c16, %c0_15] : memref<152x128xbf16, #tpu.memory_space<vmem>>, vector<120x128xbf16>
    tpu.vector_store %arg10[%c16, %c0_15], %19 {strides = array<i32>} : memref<152x128xbf16, #tpu.memory_space<vmem>>, vector<120x128xbf16>,
    %c0_16 = arith.constant 0 : index
    %c0_17 = arith.constant 0 : index
    %21 = vector.load %arg10[%c0_16, %c0_17] : memref<152x128xbf16, #tpu.memory_space<vmem>>, vector<120x128xbf16>
    %c0_18 = arith.constant 0 : index
    %c0_19 = arith.constant 0 : index
    %c0_20 = arith.constant 0 : index
    %22 = vector.load %arg4[%c0_18, %c0_19, %c0_20] : memref<9x128x128xbf16, #tpu.memory_space<vmem>>, vector<1x128x128xbf16>
    %23 = vector.shape_cast %22 : vector<1x128x128xbf16> to vector<128x128xbf16>
    %cst_21 = arith.constant dense<0.000000e+00> : vector<120x128xf32>
    %24 = tpu.matmul %21, %23, %cst_21 {dimension_numbers = #tpu.dot_dimension_numbers<[1], [0], [0], [1], [0, 0, 1, 1], [], []>} : vector<120x128xbf16>, vector<128x128xbf16>, vector<120x128xf32> -> vector<120x128xf32>
    %c1 = arith.constant 1 : index
    %c0_22 = arith.constant 0 : index
    %25 = vector.load %arg10[%c1, %c0_22] : memref<152x128xbf16, #tpu.memory_space<vmem>>, vector<120x128xbf16>
    %c1_23 = arith.constant 1 : index
    %c0_24 = arith.constant 0 : index
    %c0_25 = arith.constant 0 : index
    %26 = vector.load %arg4[%c1_23, %c0_24, %c0_25] : memref<9x128x128xbf16, #tpu.memory_space<vmem>>, vector<1x128x128xbf16>
    %27 = vector.shape_cast %26 : vector<1x128x128xbf16> to vector<128x128xbf16>
    %cst_26 = arith.constant dense<0.000000e+00> : vector<120x128xf32>
    %28 = tpu.matmul %25, %27, %cst_26 {dimension_numbers = #tpu.dot_dimension_numbers<[1], [0], [0], [1], [0, 0, 1, 1], [], []>} : vector<120x128xbf16>, vector<128x128xbf16>, vector<120x128xf32> -> vector<120x128xf32>
    %29 = arith.addf %24, %28 : vector<120x128xf32>
    %c2 = arith.constant 2 : index
    %c0_27 = arith.constant 0 : index
    %30 = vector.load %arg10[%c2, %c0_27] : memref<152x128xbf16, #tpu.memory_space<vmem>>, vector<120x128xbf16>
    %c2_28 = arith.constant 2 : index
    %c0_29 = arith.constant 0 : index
    %c0_30 = arith.constant 0 : index
    %31 = vector.load %arg4[%c2_28, %c0_29, %c0_30] : memref<9x128x128xbf16, #tpu.memory_space<vmem>>, vector<1x128x128xbf16>
    %32 = vector.shape_cast %31 : vector<1x128x128xbf16> to vector<128x128xbf16>
    %cst_31 = arith.constant dense<0.000000e+00> : vector<120x128xf32>
    %33 = tpu.matmul %30, %32, %cst_31 {dimension_numbers = #tpu.dot_dimension_numbers<[1], [0], [0], [1], [0, 0, 1, 1], [], []>} : vector<120x128xbf16>, vector<128x128xbf16>, vector<120x128xf32> -> vector<120x128xf32>
    %34 = arith.addf %29, %33 : vector<120x128xf32>
    %c15 = arith.constant 15 : index
    %c0_32 = arith.constant 0 : index
    %35 = vector.load %arg10[%c15, %c0_32] : memref<152x128xbf16, #tpu.memory_space<vmem>>, vector<120x128xbf16>
    %c3 = arith.constant 3 : index
    %c0_33 = arith.constant 0 : index
    %c0_34 = arith.constant 0 : index
    %36 = vector.load %arg4[%c3, %c0_33, %c0_34] : memref<9x128x128xbf16, #tpu.memory_space<vmem>>, vector<1x128x128xbf16>
    %37 = vector.shape_cast %36 : vector<1x128x128xbf16> to vector<128x128xbf16>
    %cst_35 = arith.constant dense<0.000000e+00> : vector<120x128xf32>
    %38 = tpu.matmul %35, %37, %cst_35 {dimension_numbers = #tpu.dot_dimension_numbers<[1], [0], [0], [1], [0, 0, 1, 1], [], []>} : vector<120x128xbf16>, vector<128x128xbf16>, vector<120x128xf32> -> vector<120x128xf32>
    %39 = arith.addf %34, %38 : vector<120x128xf32>
    %c16_36 = arith.constant 16 : index
    %c0_37 = arith.constant 0 : index
    %40 = vector.load %arg10[%c16_36, %c0_37] : memref<152x128xbf16, #tpu.memory_space<vmem>>, vector<120x128xbf16>
    %c4 = arith.constant 4 : index
    %c0_38 = arith.constant 0 : index
    %c0_39 = arith.constant 0 : index
    %41 = vector.load %arg4[%c4, %c0_38, %c0_39] : memref<9x128x128xbf16, #tpu.memory_space<vmem>>, vector<1x128x128xbf16>
    %42 = vector.shape_cast %41 : vector<1x128x128xbf16> to vector<128x128xbf16>
    %cst_40 = arith.constant dense<0.000000e+00> : vector<120x128xf32>
    %43 = tpu.matmul %40, %42, %cst_40 {dimension_numbers = #tpu.dot_dimension_numbers<[1], [0], [0], [1], [0, 0, 1, 1], [], []>} : vector<120x128xbf16>, vector<128x128xbf16>, vector<120x128xf32> -> vector<120x128xf32>
    %44 = arith.addf %39, %43 : vector<120x128xf32>
    %c17 = arith.constant 17 : index
    %c0_41 = arith.constant 0 : index
    %45 = vector.load %arg10[%c17, %c0_41] : memref<152x128xbf16, #tpu.memory_space<vmem>>, vector<120x128xbf16>
    %c5 = arith.constant 5 : index
    %c0_42 = arith.constant 0 : index
    %c0_43 = arith.constant 0 : index
    %46 = vector.load %arg4[%c5, %c0_42, %c0_43] : memref<9x128x128xbf16, #tpu.memory_space<vmem>>, vector<1x128x128xbf16>
    %47 = vector.shape_cast %46 : vector<1x128x128xbf16> to vector<128x128xbf16>
    %cst_44 = arith.constant dense<0.000000e+00> : vector<120x128xf32>
    %48 = tpu.matmul %45, %47, %cst_44 {dimension_numbers = #tpu.dot_dimension_numbers<[1], [0], [0], [1], [0, 0, 1, 1], [], []>} : vector<120x128xbf16>, vector<128x128xbf16>, vector<120x128xf32> -> vector<120x128xf32>
    %49 = arith.addf %44, %48 : vector<120x128xf32>
    %c30 = arith.constant 30 : index
    %c0_45 = arith.constant 0 : index
    %50 = vector.load %arg10[%c30, %c0_45] : memref<152x128xbf16, #tpu.memory_space<vmem>>, vector<120x128xbf16>
    %c6 = arith.constant 6 : index
    %c0_46 = arith.constant 0 : index
    %c0_47 = arith.constant 0 : index
    %51 = vector.load %arg4[%c6, %c0_46, %c0_47] : memref<9x128x128xbf16, #tpu.memory_space<vmem>>, vector<1x128x128xbf16>
    %52 = vector.shape_cast %51 : vector<1x128x128xbf16> to vector<128x128xbf16>
    %cst_48 = arith.constant dense<0.000000e+00> : vector<120x128xf32>
    %53 = tpu.matmul %50, %52, %cst_48 {dimension_numbers = #tpu.dot_dimension_numbers<[1], [0], [0], [1], [0, 0, 1, 1], [], []>} : vector<120x128xbf16>, vector<128x128xbf16>, vector<120x128xf32> -> vector<120x128xf32>
    %54 = arith.addf %49, %53 : vector<120x128xf32>
    %c31 = arith.constant 31 : index
    %c0_49 = arith.constant 0 : index
    %55 = vector.load %arg10[%c31, %c0_49] : memref<152x128xbf16, #tpu.memory_space<vmem>>, vector<120x128xbf16>
    %c7 = arith.constant 7 : index
    %c0_50 = arith.constant 0 : index
    %c0_51 = arith.constant 0 : index
    %56 = vector.load %arg4[%c7, %c0_50, %c0_51] : memref<9x128x128xbf16, #tpu.memory_space<vmem>>, vector<1x128x128xbf16>
    %57 = vector.shape_cast %56 : vector<1x128x128xbf16> to vector<128x128xbf16>
    %cst_52 = arith.constant dense<0.000000e+00> : vector<120x128xf32>
    %58 = tpu.matmul %55, %57, %cst_52 {dimension_numbers = #tpu.dot_dimension_numbers<[1], [0], [0], [1], [0, 0, 1, 1], [], []>} : vector<120x128xbf16>, vector<128x128xbf16>, vector<120x128xf32> -> vector<120x128xf32>
    %59 = arith.addf %54, %58 : vector<120x128xf32>
    %c32 = arith.constant 32 : index
    %c0_53 = arith.constant 0 : index
    %60 = vector.load %arg10[%c32, %c0_53] : memref<152x128xbf16, #tpu.memory_space<vmem>>, vector<120x128xbf16>
    %c8 = arith.constant 8 : index
    %c0_54 = arith.constant 0 : index
    %c0_55 = arith.constant 0 : index
    %61 = vector.load %arg4[%c8, %c0_54, %c0_55] : memref<9x128x128xbf16, #tpu.memory_space<vmem>>, vector<1x128x128xbf16>
    %62 = vector.shape_cast %61 : vector<1x128x128xbf16> to vector<128x128xbf16>
    %cst_56 = arith.constant dense<0.000000e+00> : vector<120x128xf32>
    %63 = tpu.matmul %60, %62, %cst_56 {dimension_numbers = #tpu.dot_dimension_numbers<[1], [0], [0], [1], [0, 0, 1, 1], [], []>} : vector<120x128xbf16>, vector<128x128xbf16>, vector<120x128xf32> -> vector<120x128xf32>
    %64 = arith.addf %59, %63 : vector<120x128xf32>
    %c0_57 = arith.constant 0 : index
    %c0_58 = arith.constant 0 : index
    %65 = vector.load %arg5[%c0_57, %c0_58] : memref<1x128xf32, #tpu.memory_space<vmem>>, vector<1x128xf32>
    %66 = vector.broadcast %65 : vector<1x128xf32> to vector<120x128xf32>
    %67 = arith.addf %64, %66 : vector<120x128xf32>
    %c0_59 = arith.constant 0 : index
    %c0_60 = arith.constant 0 : index
    %c0_61 = arith.constant 0 : index
    %68 = vector.load %arg1[%c0_59, %c0_60, %c0_61] : memref<1x120x36xbf16, #tpu.memory_space<vmem>>, vector<1x120x36xbf16>
    %69 = vector.shape_cast %68 : vector<1x120x36xbf16> to vector<120x36xbf16>
    %c0_62 = arith.constant 0 : index
    %c0_63 = arith.constant 0 : index
    %70 = vector.load %arg6[%c0_62, %c0_63] : memref<36x128xbf16, #tpu.memory_space<vmem>>, vector<36x128xbf16>
    %cst_64 = arith.constant dense<0.000000e+00> : vector<120x128xf32>
    %71 = tpu.matmul %69, %70, %cst_64 {dimension_numbers = #tpu.dot_dimension_numbers<[1], [0], [0], [1], [0, 0, 1, 1], [], []>} : vector<120x36xbf16>, vector<36x128xbf16>, vector<120x128xf32> -> vector<120x128xf32>
    %c0_65 = arith.constant 0 : index
    %c0_66 = arith.constant 0 : index
    %72 = vector.load %arg7[%c0_65, %c0_66] : memref<1x128xf32, #tpu.memory_space<vmem>>, vector<1x128xf32>
    %73 = vector.broadcast %72 : vector<1x128xf32> to vector<120x128xf32>
    %74 = arith.addf %71, %73 : vector<120x128xf32>
    %75 = arith.addf %67, %74 : vector<120x128xf32>
    %cst_67 = arith.constant 0.000000e+00 : f32
    %76 = vector.broadcast %cst_67 : f32 to vector<120x128xf32>
    %77 = arith.cmpf oge, %75, %76 : vector<120x128xf32>
    %cst_68 = arith.constant 0.00999999977 : f32
    %78 = vector.broadcast %cst_68 : f32 to vector<120x128xf32>
    %79 = arith.mulf %78, %75 : vector<120x128xf32>
    %80 = arith.select %77, %75, %79 : vector<120x128xi1>, vector<120x128xf32>
    %81 = arith.truncf %80 : vector<120x128xf32> to vector<120x128xbf16>
    %c0_69 = arith.constant 0 : index
    %c0_70 = arith.constant 0 : index
    %c0_71 = arith.constant 0 : index
    %82 = vector.load %arg9[%c0_69, %c0_70, %c0_71] : memref<1x120x128xbf16, #tpu.memory_space<vmem>>, vector<1x120x128xbf16>
    %83 = vector.shape_cast %82 : vector<1x120x128xbf16> to vector<120x128xbf16>
    %84 = vector.shape_cast %81 : vector<120x128xbf16> to vector<1x120x128xbf16>
    tpu.vector_store %arg9[%c0_69, %c0_70, %c0_71], %84 {strides = array<i32>} : memref<1x120x128xbf16, #tpu.memory_space<vmem>>, vector<1x120x128xbf16>,
    return
  }
  func.func @transform_0(%arg0: i32) -> (i32, i32, i32) {
    %c0_i32 = arith.constant 0 : i32
    %c0_i32_0 = arith.constant 0 : i32
    %c0_i32_1 = arith.constant 0 : i32
    return %arg0, %c0_i32, %c0_i32_0 : i32, i32, i32
  }
  func.func @transform_1(%arg0: i32) -> (i32, i32) {
    %c0_i32 = arith.constant 0 : i32
    %c0_i32_0 = arith.constant 0 : i32
    %c0_i32_1 = arith.constant 0 : i32
    return %c0_i32, %c0_i32_0 : i32, i32
  }
  func.func @transform_2(%arg0: i32) -> (i32, i32) {
    %c0_i32 = arith.constant 0 : i32
    %c0_i32_0 = arith.constant 0 : i32
    %c0_i32_1 = arith.constant 0 : i32
    return %c0_i32, %c0_i32_0 : i32, i32
  }
  func.func @transform_3(%arg0: i32) -> (i32, i32, i32) {
    %c0_i32 = arith.constant 0 : i32
    %c0_i32_0 = arith.constant 0 : i32
    %c0_i32_1 = arith.constant 0 : i32
    %c0_i32_2 = arith.constant 0 : i32
    return %c0_i32, %c0_i32_0, %c0_i32_1 : i32, i32, i32
  }
  func.func @transform_4(%arg0: i32) -> (i32, i32) {
    %c0_i32 = arith.constant 0 : i32
    %c0_i32_0 = arith.constant 0 : i32
    %c0_i32_1 = arith.constant 0 : i32
    return %c0_i32, %c0_i32_0 : i32, i32
  }
  func.func @transform_5(%arg0: i32) -> (i32, i32) {
    %c0_i32 = arith.constant 0 : i32
    %c0_i32_0 = arith.constant 0 : i32
    %c0_i32_1 = arith.constant 0 : i32
    return %c0_i32, %c0_i32_0 : i32, i32
  }
  func.func @transform_6(%arg0: i32) -> (i32, i32) {
    %c0_i32 = arith.constant 0 : i32
    %c0_i32_0 = arith.constant 0 : i32
    %c0_i32_1 = arith.constant 0 : i32
    return %c0_i32, %c0_i32_0 : i32, i32
  }
  func.func @transform_7(%arg0: i32) -> (i32, i32) {
    %c0_i32 = arith.constant 0 : i32
    %c0_i32_0 = arith.constant 0 : i32
    %c0_i32_1 = arith.constant 0 : i32
    return %c0_i32, %c0_i32_0 : i32, i32
  }
  func.func @transform_8(%arg0: i32) -> (i32, i32, i32) {
    %c0_i32 = arith.constant 0 : i32
    %c0_i32_0 = arith.constant 0 : i32
    %c0_i32_1 = arith.constant 0 : i32
    return %arg0, %c0_i32, %c0_i32_0 : i32, i32, i32
  }
}

</mosaic_0001>

<bundles_post_ra>
// kernel: res_block_forward.1
= control target key start
LH: loop header
LB: loop body
LE: loop exit
PB: predicated region body
PF: predicated region fallthrough
CT: control target
= control target key end

     0   :  { %s3718_s27 = smov 0   ;;  %s4641_s0 = inlined_call_operand.vmem [shape: bf16[2,120,36], index: 0, kind: input, shape index: {}]   ;;  %s4642_s1 = inlined_call_operand.vmem [shape: bf16[36,128], index: 1, kind: input, shape index: {}]   ;;  %s4643_s2 = inlined_call_operand.vmem [shape: f32[1,128], index: 2, kind: input, shape index: {}]   ;;  %s4644_s3 = inlined_call_operand.vmem [shape: bf16[9,128,128], index: 3, kind: input, shape index: {}]   ;;  %s4645_s4 = inlined_call_operand.vmem [shape: f32[1,128], index: 4, kind: input, shape index: {}]   ;;  %s4646_s5 = inlined_call_operand.vmem [shape: bf16[36,128], index: 5, kind: input, shape index: {}]   ;;  %s4647_s6 = inlined_call_operand.vmem [shape: f32[1,128], index: 6, kind: input, shape index: {}]   ;;  %s4648_s7 = inlined_call_operand.vmem [shape: f32[120,1], index: 7, kind: input, shape index: {}]   ;;  %s4649_s8 = inlined_call_operand.vmem [shape: bf16[2,120,128], index: 8, kind: output, shape index: {}]  }
   0x1 LB: > { %s2705_s28 = sadd.s32 4294967295, %s3670_s27   ;;  %p2709_p0 = scmp.ge.s32.totalorder %s3670_s27, 1  ;;  %s3670_s27 = sphi %s3718_s27, %s18_s27  }
   0x2   : > { %p262_p1 = scmp.lt.s32.totalorder %s3670_s27, 3 }
   0x4   : > { %p263_p2 = pnand %p2709_p0, %p262_p1 }
   0x6   : > { %266 = sbr.rel (%p263_p2) target bundleno = 704 (0x2c0), region = 52 }
   0xb   : > { %v326_v0 = vld [vmem:[%s4642_s1 + $0x10] sm:$0x3]  ;;  %p296_p3 = scmp.lt.s32.totalorder %s2705_s28, 1  ;;  %vm409_vm0 = vcmask 1041408   ;;  %v3672_v3 = vmov 0   ;;  %v510_v4 = vld [vmem:[%s4648_s7 + $0x20] sm:$0xff] }
   0xc   : > { %v378_v1 = vunpack.c.l.b16 %v326_v0  ;;  %v508_v2 = vld [vmem:[%s4648_s7 + $0x10] sm:$0xff]  ;;  %3658 = vset.pattern.permute.xlu0 %v3672_v3  ;;  %611 = vst [vmem:[#allocation2] sm:$0xf] %v3672_v3  ;;  %3659 = vset.pattern.permute.xlu1 %v3672_v3  ;;  %v3282_v8 = vld [vmem:[%s4642_s1 + $0x8] sm:$0xff]  ;;  %v509_v9 = vld [vmem:[%s4648_s7 + $0x18] sm:$0xff]  ;;  %vm384_vm1 = vcmask 293888  }
   0xd   : > { %v512_v5 = vld [vmem:[%s4648_s7 + $0x30] sm:$0xff]  ;;  %612 = vst [vmem:[#allocation2 + $0x4] sm:$0xf] %v3672_v3  ;;  %533 = vperm.xlu0 %3658, %v508_v2   ;;  %s4655_s28 = smov (!%p296_p3, %s2705_s28), 1  ;;  %543 = vperm.xlu1 %3659, %v510_v4   ;;  %v511_v10 = vld [vmem:[%s4648_s7 + $0x28] sm:$0xff]  ;;  %v3281_v11 = vld [vmem:[%s4642_s1] sm:$0xff] }
   0xe   : > { %v381_v6 = vpack.c.b16 %v378_v1, %v378_v1  ;;  %613 = vst [vmem:[#allocation2 + $0x44] sm:$0xf] %v3672_v3  ;;  %3660 = vset.pattern.permute.xlu2 %v3672_v3  ;;  %s3648_s17 = smul.u32 60, %s4655_s28  ;;  %v513_v12 = vld [vmem:[%s4648_s7 + $0x38] sm:$0xff]  ;;  %v514_v14 = vld [vmem:[%s4648_s7 + $0x40] sm:$0xff]  ;;  %v515_v15 = vld [vmem:[%s4648_s7 + $0x48] sm:$0xff] }
   0xf   : > { %614 = vst [vmem:[#allocation2 + $0x48] sm:$0xf] %v3672_v3  ;;  %553 = vperm.xlu2 %3660, %v512_v5   ;;  %v506_v16 = vld [vmem:[%s4648_s7] sm:$0xff]  ;;  %v507_v17 = vld [vmem:[%s4648_s7 + $0x8] sm:$0xff]  ;;  %v516_v18 = vld [vmem:[%s4648_s7 + $0x50] sm:$0xff]  ;;  %vm1028_vm9 = vcmask 1046528  }
  0x10   : > { %v411_v7 = vsel %vm409_vm0, %v381_v6, 0  ;;  %s3759_s26 = scalar_lea.vmem %s4641_s0, %s3648_s17  ;;  %v518_v20 = vld [vmem:[%s4648_s7 + $0x60] sm:$0xff]  ;;  %v519_v21 = vld [vmem:[%s4648_s7 + $0x68] sm:$0xff]  ;;  %v517_v24 = vld [vmem:[%s4648_s7 + $0x58] sm:$0xff]  ;;  %vm734_vm6 = vsmask.f32 7424  ;;  %s4560_s23 = scalar_lea.vmem %s4649_s8, %s3648_s17 }
  0x11   : > { %418 = vmatpush.bf16.msra.mxu0 %v411_v7  ;;  %v3274_v13 = vld [vmem:[%s3759_s26] sm:$0xff]  ;;  %v3275_v19 = vld [vmem:[%s3759_s26 + $0x8] sm:$0xff]  ;;  %v3276_v22 = vld [vmem:[%s3759_s26 + $0x10] sm:$0xff]  ;;  %vm1236_vm10 = vsmask.f32 4352  ;;  %vm1899_vm13 = vcmask 1044480  }
  0x12   : > { %v3277_v23 = vld [vmem:[%s3759_s26 + $0x18] sm:$0xff]  ;;  %v520_v25 = vld [vmem:[%s4648_s7 + $0x70] sm:$0xff]  ;;  %v3278_v26 = vld [vmem:[%s3759_s26 + $0x20] sm:$0xff] }
  0x13   : > { %v3279_v27 = vld [vmem:[%s3759_s26 + $0x28] sm:$0xff]  ;;  %v3280_v28 = vld [vmem:[%s3759_s26 + $0x30] sm:$0xff]  ;;  %v3304_v29 = vld [vmem:[%s4644_s3 + $0x78] sm:$0xff] }
  0x14   : > { %854 = vmatpush.bf16.msra.mxu1 %v3304_v29  ;;  %3606 = vmatpush.bf16.msra.mxu3 %v3304_v29  ;;  %v3303_v30 = vld [vmem:[%s4644_s3 + $0x70] sm:$0xff]  ;;  %v3302_v31 = vld [vmem:[%s4644_s3 + $0x68] sm:$0xff]  ;;  %v321_v32 = vld [vmem:[%s3759_s26 + $0x38] sm:$0xf] }
  0x15   : > { %419 = vmatpush.bf16.msra.mxu0 %v3282_v8  ;;  %538 = vperm.xlu0 %3658, %v509_v9   ;;  %v3296_v33 = vld [vmem:[%s4644_s3 + $0x38] sm:$0xff]  ;;  %v360_v34 = vunpack.c.l.b16 %v321_v32  ;;  %v3301_v35 = vld [vmem:[%s4644_s3 + $0x60] sm:$0xff]  ;;  %v3295_v37 = vld [vmem:[%s4644_s3 + $0x30] sm:$0xff] }
  0x16   : > { %548 = vperm.xlu1 %3659, %v511_v10   ;;  %3614 = vmatpush.bf16.msra.mxu2 %v3296_v33  ;;  %v3300_v39 = vld [vmem:[%s4644_s3 + $0x58] sm:$0xff]  ;;  %v3294_v41 = vld [vmem:[%s4644_s3 + $0x28] sm:$0xff]  ;;  %v3299_v42 = vld [vmem:[%s4644_s3 + $0x50] sm:$0xff] }
  0x17   : > { %558 = vperm.xlu2 %3660, %v513_v12   ;;  %v368_v38 = vpack.c.b16 %v360_v34, %v360_v34  ;;  %v3320_v40 = vld [vmem:[%s4644_s3 + $0xf8] sm:$0xff]  ;;  %v3319_v43 = vld [vmem:[%s4644_s3 + $0xf0] sm:$0xff]  ;;  %v3293_v44 = vld [vmem:[%s4644_s3 + $0x20] sm:$0xff] }
  0x18   : > { %855 = vmatpush.bf16.msra.mxu1 %v3303_v30  ;;  %3607 = vmatpush.bf16.msra.mxu3 %v3303_v30  ;;  %v3298_v47 = vld [vmem:[%s4644_s3 + $0x48] sm:$0xff]  ;;  %v3292_v49 = vld [vmem:[%s4644_s3 + $0x18] sm:$0xff]  ;;  %v3297_v50 = vld [vmem:[%s4644_s3 + $0x40] sm:$0xff] }
  0x19   : > { %420 = vmatpush.bf16.msra.mxu0 %v3281_v11  ;;  %v3318_v48 = vld [vmem:[%s4644_s3 + $0xe8] sm:$0xff]  ;;  %v3317_v51 = vld [vmem:[%s4644_s3 + $0xe0] sm:$0xff]  ;;  %v3291_v52 = vld [vmem:[%s4644_s3 + $0x10] sm:$0xff] }
  0x1a   : > { %3615 = vmatpush.bf16.msra.mxu2 %v3295_v37  ;;  %v3870_v53 = vld [vmem:[%s4643_s2] ss:$0 sm:$0xff]  ;;  %v3316_v57 = vld [vmem:[%s4644_s3 + $0xd8] sm:$0xff]  ;;  %v3290_v58 = vld [vmem:[%s4644_s3 + $0x8] sm:$0xff] }
  0x1b   : > { %v3315_v60 = vld [vmem:[%s4644_s3 + $0xd0] sm:$0xff]  ;;  %v3289_v61 = vld [vmem:[%s4644_s3] sm:$0xff]  ;;  %v3314_v1 = vld [vmem:[%s4644_s3 + $0xc8] sm:$0xff] }
  0x1c   : > { %2748 = vmatmul.msk.bf16.vlgmr.msra.gmra.mxu0 %vm384_vm1, %v3274_v13  ;;  %856 = vmatpush.bf16.msra.mxu1 %v3302_v31  ;;  %v3313_v7 = vld [vmem:[%s4644_s3 + $0xc0] sm:$0xff]  ;;  %v3328_v32 = vld [vmem:[%s4644_s3 + $0x138] sm:$0xff] }
  0x1d   : > { %563 = vperm.xlu0 %3658, %v514_v14   ;;  %3608 = vmatpush.bf16.msra.mxu3 %v3302_v31  ;;  %v3896_v10 = vld [vmem:[#allocation2] sm:$0xff]  }
  0x1e   : > { %568 = vperm.xlu1 %3659, %v515_v15   ;;  %1364 = vmatpush.bf16.msrb.mxu0 %v3320_v40  ;;  %v738_v13 = vshll.u32 %v3896_v10, 16  ;;  %v736_v15 = vshrl.u32 %v3896_v10, 16  ;;  %v3312_v40 = vld [vmem:[%s4644_s3 + $0xb8] sm:$0xff] }
  0x1f   : > { %523 = vperm.xlu2 %3660, %v506_v16   ;;  %3616 = vmatpush.bf16.msra.mxu2 %v3294_v41 }
  0x20   : > { %857 = vmatpush.bf16.msra.mxu1 %v3301_v35  ;;  %v740_v16 = vrot.slane %v738_v13, 1 }
  0x21   : > { %3609 = vmatpush.bf16.msra.mxu3 %v3301_v35 }
  0x22   : > { %1365 = vmatpush.bf16.msrb.mxu0 %v3319_v43 }
  0x23   : > { %3617 = vmatpush.bf16.msra.mxu2 %v3293_v44 }
  0x24   : > { %858 = vmatpush.bf16.msra.mxu1 %v3300_v39 }
  0x25   : > { %528 = vperm.xlu0 %3658, %v507_v17   ;;  %3610 = vmatpush.bf16.msra.mxu3 %v3300_v39 }
  0x26   : > { %573 = vperm.xlu1 %3659, %v516_v18   ;;  %1366 = vmatpush.bf16.msrb.mxu0 %v3318_v48 }
  0x27   : > { %578 = vperm.xlu2 %3660, %v517_v24   ;;  %3618 = vmatpush.bf16.msra.mxu2 %v3292_v49 }
  0x28   : > { %859 = vmatpush.bf16.msra.mxu1 %v3299_v42 }
  0x29   : > { %3611 = vmatpush.bf16.msra.mxu3 %v3299_v42 }
  0x2a   : > { %1367 = vmatpush.bf16.msrb.mxu0 %v3317_v51 }
  0x2b   : > { %3619 = vmatpush.bf16.msra.mxu2 %v3291_v52 }
  0x2c   : > { %2749 = vmatmul.msk.bf16.gmra.mxu0 %vm384_vm1, %v3275_v19  ;;  %860 = vmatpush.bf16.msra.mxu1 %v3298_v47 }
  0x2d   : > { %583 = vperm.xlu0 %3658, %v518_v20   ;;  %3612 = vmatpush.bf16.msra.mxu3 %v3298_v47 }
  0x2e   : > { %588 = vperm.xlu1 %3659, %v519_v21   ;;  %1368 = vmatpush.bf16.msrb.mxu0 %v3316_v57  ;;  %v741_v21 = vor.u32 %v740_v16, %v736_v15  ;;  %v3324_v15 = vld [vmem:[%s4644_s3 + $0x118] sm:$0xff] }
  0x2f   : > { %593 = vperm.xlu2 %3660, %v520_v25   ;;  %3620 = vmatpush.bf16.msra.mxu2 %v3290_v58 }
  0x30   : > { %861 = vmatpush.bf16.msra.mxu1 %v3297_v50 }
  0x31   : > { %3613 = vmatpush.bf16.msra.mxu3 %v3297_v50 }
  0x32   : > { %1369 = vmatpush.bf16.msrb.mxu0 %v3315_v60 }
  0x33   : > { %3621 = vmatpush.bf16.msra.mxu2 %v3289_v61 }
  0x34   : > { %959 = vmatpush.bf16.msrb.mxu1 %v3296_v33  ;;  %v3540_v33 = vld [vmem:[#allocation2 + $0x4] sm:$0x8] }
  0x35   : > { %1100 = vmatpush.bf16.msrb.mxu3 %v3312_v40 }
  0x36   : > { %1370 = vmatpush.bf16.msrb.mxu0 %v3314_v1 }
  0x38   : > { %960 = vmatpush.bf16.msrb.mxu1 %v3295_v37 }
  0x3a   : > { %1371 = vmatpush.bf16.msrb.mxu0 %v3313_v7 }
  0x3c   : > { %2750 = vmatmul.msk.bf16.gmra.mxu0 %vm384_vm1, %v3276_v22  ;;  %961 = vmatpush.bf16.msrb.mxu1 %v3294_v41 }
  0x40   : > { %962 = vmatpush.bf16.msrb.mxu1 %v3293_v44  ;;  %v3326_v44 = vld [vmem:[%s4644_s3 + $0x128] sm:$0xff] }
  0x44   : > { %963 = vmatpush.bf16.msrb.mxu1 %v3292_v49 }
  0x48   : > { %964 = vmatpush.bf16.msrb.mxu1 %v3291_v52 }
  0x4c   : > { %2751 = vmatmul.msk.bf16.gmra.mxu0 %vm384_vm1, %v3277_v23  ;;  %965 = vmatpush.bf16.msrb.mxu1 %v3290_v58 }
  0x50   : > { %966 = vmatpush.bf16.msrb.mxu1 %v3289_v61 }
  0x5c   : > { %2752 = vmatmul.msk.bf16.gmra.mxu0 %vm384_vm1, %v3278_v26 }
  0x69   : > { %v3845_v45 = vpop.permute.xlu2 %553 }
  0x6c   : > { %2753 = vmatmul.msk.bf16.gmra.mxu0 %vm384_vm1, %v3279_v27 }
  0x71   : > { %v3872_v55 = vpop.permute.xlu2 %558 }
  0x79   : > { %v524_v2 = vpop.permute.xlu2 %523 }
  0x7c   : > { %2754 = vmatmul.msk.bf16.gmra.mxu0 %vm384_vm1, %v3280_v28 }
  0x7f   : > { %v3821_v36 = vpop.permute.xlu0 %533 }
  0x87   : > { %v3847_v46 = vpop.permute.xlu0 %538 }
  0x8c   : > { %2755 = vmatmul.msk.bf16.gmra.mxu0 %vm384_vm1, %v368_v38  ;;  %v3327_v38 = vld [vmem:[%s4644_s3 + $0x130] sm:$0xff] }
  0x8f   : > { %v3874_v56 = vpop.permute.xlu0 %563 }
  0x97   : > { %v529_v4 = vpop.permute.xlu0 %528 }
  0x99   : > { %v422_v54 = vpop.f32.mrf.mxu0 }
  0x9a   : > { %v423_v59 = vadd.f32 %v3870_v53, %v422_v54 }
  0x9c   : > { %v476_v62 = vmul.f32 0.01, %v423_v59  ;;  %vm461_vm2 = vcmp.ge.f32.partialorder %v423_v59, 0.0 }
  0x9e   : > { %v491_v3 = vsel %vm461_vm2, %v423_v59, %v476_v62  ;;  %v3325_v62 = vld [vmem:[%s4644_s3 + $0x120] sm:$0xff] }
  0x9f   : > { %v596_v8 = vmul.f32 %v524_v2, %v491_v3 }
  0xa1   : > { %v424_v63 = vpop.f32.mrf.mxu0 }
  0xa2   : > { %v425_v0 = vadd.f32 %v3870_v53, %v424_v63 }
  0xa4   : > { %vm462_vm3 = vcmp.ge.f32.partialorder %v425_v0, 0.0  ;;  %v477_v5 = vmul.f32 0.01, %v425_v0 }
  0xa6   : > { %v492_v6 = vsel %vm462_vm3, %v425_v0, %v477_v5 }
  0xa7   : > { %v597_v9 = vmul.f32 %v529_v4, %v492_v6 }
  0xa9   : > { %v3898_v11 = vpack.c.bf16 %v597_v9, %v596_v8  ;;  %v427_v12 = vpop.f32.mrf.mxu0 }
  0xaa   : > { %v428_v14 = vadd.f32 %v3870_v53, %v427_v12 }
  0xab   : > { %3508 = vst [vmem:[#allocation2 + $0x8] sm:$0xff] %v3898_v11  }
  0xac   : > { %v478_v17 = vmul.f32 0.01, %v428_v14  ;;  %vm463_vm4 = vcmp.ge.f32.partialorder %v428_v14, 0.0 }
  0xae   : > { %v493_v22 = vsel %vm463_vm4, %v428_v14, %v478_v17 }
  0xaf   : > { %v598_v27 = vmul.f32 %v3821_v36, %v493_v22  ;;  %v544_v36 = vpop.permute.xlu1 %543 }
  0xb1   : > { %v429_v18 = vpop.f32.mrf.mxu0 }
  0xb2   : > { %v430_v19 = vadd.f32 %v3870_v53, %v429_v18  ;;  %v3905_v20 = vld [vmem:[#allocation2 + $0x8] sm:$0xff]  ;;  %v3344_v18 = vld [vmem:[%s4644_s3 + $0x178] sm:$0xff] }
  0xb3   : > { %v743_v24 = vshll.u32 %v3905_v20, 16  ;;  %v3623_v34 = vld [vmem:[#allocation2 + $0x4] sm:$0xf0]   ;;  %v747_v50 = vshrl.u32 %v3905_v20, 16  ;;  %v1030_v51 = vrot.slane %v3905_v20, 1  ;;  %1763 = vmatpush.bf16.msrb.mxu2 %v3344_v18 }
  0xb4   : > { %vm464_vm5 = vcmp.ge.f32.partialorder %v430_v19, 0.0  ;;  %v479_v23 = vmul.f32 0.01, %v430_v19  ;;  %v3541_v37 = vor.u32 %v3623_v34, %v3540_v33  ;;  %v3574_v33 = vld [vmem:[#allocation2 + $0xc] sm:$0x8] }
  0xb5   : > { %v745_v26 = vrot.slane %v743_v24, 1 }
  0xb6   : > { %v494_v25 = vsel %vm464_vm5, %v430_v19, %v479_v23  ;;  %v1238_v42 = vshrl.u32 %v3541_v37, 16  ;;  %v1241_v43 = vshll.u32 %v3541_v37, 16  ;;  %v3311_v19 = vld [vmem:[%s4644_s3 + $0xb0] sm:$0xff] }
  0xb7   : > { %v599_v28 = vmul.f32 %v3847_v46, %v494_v25  ;;  %v746_v29 = vsel %vm734_vm6, %v741_v21, %v745_v26  ;;  %v749_v58 = vor.u32 %v747_v50, %v745_v26  ;;  %v549_v63 = vpop.permute.xlu1 %548  ;;  %1101 = vmatpush.bf16.msrb.mxu3 %v3311_v19  ;;  %v3323_v21 = vld [vmem:[%s4644_s3 + $0x110] sm:$0xff]  ;;  %v3322_v25 = vld [vmem:[%s4644_s3 + $0x108] sm:$0xff] }
  0xb8   : > { %862 = vmatmul.bf16.vlgmr.msra.gmra.mxu1 %v746_v29  ;;  %v1240_v59 = vrot.slane %v1238_v42, 3  ;;  %v1243_v60 = vrot.slane %v1241_v43, 4  ;;  %v3343_v23 = vld [vmem:[%s4644_s3 + $0x170] sm:$0xff] }
  0xb9   : > { %v3911_v30 = vpack.c.bf16 %v599_v28, %v598_v27  ;;  %v432_v31 = vpop.f32.mrf.mxu0  ;;  %1508 = vmatpush.bf16.msra.mxu1 %v3328_v32  ;;  %1764 = vmatpush.bf16.msrb.mxu2 %v3343_v23 }
  0xba   : > { %v433_v35 = vadd.f32 %v3870_v53, %v432_v31  ;;  %v1244_v13 = vor.u32 %v1243_v60, %v1240_v59 }
  0xbb   : > { %3509 = vst [vmem:[#allocation2 + $0x10] sm:$0xff] %v3911_v30  }
  0xbc   : > { %v480_v39 = vmul.f32 0.01, %v433_v35  ;;  %vm465_vm7 = vcmp.ge.f32.partialorder %v433_v35, 0.0 }
  0xbd   : > { %1509 = vmatpush.bf16.msra.mxu1 %v3327_v38  ;;  %v3321_v38 = vld [vmem:[%s4644_s3 + $0x100] sm:$0xff] }
  0xbe   : > { %v495_v49 = vsel %vm465_vm7, %v433_v35, %v480_v39 }
  0xbf   : > { %v600_v4 = vmul.f32 %v544_v36, %v495_v49 }
  0xc1   : > { %v434_v41 = vpop.f32.mrf.mxu0  ;;  %1510 = vmatpush.bf16.msra.mxu1 %v3326_v44 }
  0xc2   : > { %v435_v46 = vadd.f32 %v3870_v53, %v434_v41  ;;  %v3928_v47 = vld [vmem:[#allocation2 + $0x10] sm:$0xff] }
  0xc3   : > { %v3625_v48 = vld [vmem:[#allocation2 + $0xc] sm:$0xff]   ;;  %977 = vmatmul.bf16.vlgmr.msra.gmra.mxu2 %v3928_v47  ;;  %v751_v54 = vshll.u32 %v3928_v47, 16  ;;  %v1032_v3 = vrot.slane %v3928_v47, 1  ;;  %v755_v32 = vshrl.u32 %v3928_v47, 16 }
  0xc4   : > { %vm466_vm8 = vcmp.ge.f32.partialorder %v435_v46, 0.0  ;;  %v481_v52 = vmul.f32 0.01, %v435_v46  ;;  %v1246_v57 = vshrl.u32 %v3625_v48, 16  ;;  %v1249_v61 = vshll.u32 %v3625_v48, 16 }
  0xc5   : > { %v753_v1 = vrot.slane %v751_v54, 1  ;;  %1511 = vmatpush.bf16.msra.mxu1 %v3325_v62  ;;  %v3944_v8 = vsel %vm1028_vm9, %v1030_v51, %v1032_v3  ;;  %v3636_v29 = vld [vmem:[#allocation2 + $0xc] sm:$0xf0]  }
  0xc6   : > { %v496_v0 = vsel %vm466_vm8, %v435_v46, %v481_v52  ;;  %v1248_v2 = vrot.slane %v1246_v57, 3  ;;  %v1251_v6 = vrot.slane %v1249_v61, 4  ;;  %v3978_v39 = vor.u32 %v3636_v29, %v3574_v33 }
  0xc7   : > { %v601_v5 = vmul.f32 %v549_v63, %v496_v0  ;;  %v754_v7 = vsel %vm734_vm6, %v749_v58, %v753_v1  ;;  %v757_v41 = vor.u32 %v755_v32, %v753_v1  ;;  %v3342_v63 = vld [vmem:[%s4644_s3 + $0x168] sm:$0xff]  ;;  %v3309_v0 = vld [vmem:[%s4644_s3 + $0xa0] sm:$0xff] }
  0xc8   : > { %867 = vmatmul.bf16.gmra.mxu1 %v754_v7  ;;  %v1252_v14 = vor.u32 %v1251_v6, %v1248_v2  ;;  %1765 = vmatpush.bf16.msrb.mxu2 %v3342_v63 }
  0xc9   : > { %v3946_v9 = vpack.c.bf16 %v601_v5, %v600_v4  ;;  %v437_v12 = vpop.f32.mrf.mxu0  ;;  %1512 = vmatpush.bf16.msra.mxu1 %v3324_v15  ;;  %v569_v15 = vpop.permute.xlu1 %568 }
  0xca   : > { %v438_v16 = vadd.f32 %v3870_v53, %v437_v12  ;;  %v1253_v17 = vsel %vm1236_vm10, %v1244_v13, %v1252_v14 }
  0xcb   : > { %3510 = vst [vmem:[#allocation2 + $0x18] sm:$0xff] %v3946_v9   ;;  %1372 = vmatmul.bf16.vlgmr.msrb.gmra.mxu0 %v1253_v17 }
  0xcc   : > { %v482_v22 = vmul.f32 0.01, %v438_v16  ;;  %vm467_vm11 = vcmp.ge.f32.partialorder %v438_v16, 0.0 }
  0xcd   : > { %1513 = vmatpush.bf16.msra.mxu1 %v3323_v21 }
  0xce   : > { %v497_v31 = vsel %vm467_vm11, %v438_v16, %v482_v22 }
  0xcf   : > { %v602_v46 = vmul.f32 %v3845_v45, %v497_v31 }
  0xd1   : > { %v439_v24 = vpop.f32.mrf.mxu0  ;;  %1514 = vmatpush.bf16.msra.mxu1 %v3322_v25 }
  0xd2   : > { %v440_v26 = vadd.f32 %v3870_v53, %v439_v24  ;;  %v3970_v27 = vld [vmem:[#allocation2 + $0x18] sm:$0xff] }
  0xd3   : > { %v3627_v28 = vld [vmem:[#allocation2 + $0x14] sm:$0xff]   ;;  %982 = vmatmul.bf16.gmra.mxu2 %v3970_v27  ;;  %v759_v35 = vshll.u32 %v3970_v27, 16  ;;  %v1034_v52 = vrot.slane %v3970_v27, 1  ;;  %v763_v6 = vshrl.u32 %v3970_v27, 16 }
  0xd4   : > { %vm468_vm12 = vcmp.ge.f32.partialorder %v440_v26, 0.0  ;;  %v483_v34 = vmul.f32 0.01, %v440_v26  ;;  %v1255_v36 = vshrl.u32 %v3627_v28, 16  ;;  %v1258_v37 = vshll.u32 %v3627_v28, 16  ;;  %v3980_v44 = vld [vmem:[#allocation2 + $0x14] sm:$0xff]  }
  0xd5   : > { %v761_v42 = vrot.slane %v759_v35, 1  ;;  %1515 = vmatpush.bf16.msra.mxu1 %v3321_v38  ;;  %v3992_v45 = vsel %vm1028_vm9, %v1032_v3, %v1034_v52  ;;  %v1901_v59 = vrot.slane %v3980_v44, 3 }
  0xd6   : > { %v498_v40 = vsel %vm468_vm12, %v440_v26, %v483_v34  ;;  %v1257_v43 = vrot.slane %v1255_v36, 3  ;;  %v1260_v49 = vrot.slane %v1258_v37, 4  ;;  %v3341_v34 = vld [vmem:[%s4644_s3 + $0x160] sm:$0xff] }
  0xd7   : > { %v603_v48 = vmul.f32 %v3872_v55, %v498_v40  ;;  %v762_v50 = vsel %vm734_vm6, %v757_v41, %v761_v42  ;;  %v1900_v55 = vrot.slane %v3978_v39, 3  ;;  %v765_v17 = vor.u32 %v763_v6, %v761_v42  ;;  %1766 = vmatpush.bf16.msrb.mxu2 %v3341_v34 }
  0xd8   : > { %872 = vmatmul.bf16.vlgmr.msra.gmra.mxu3 %v762_v50  ;;  %967 = vmatmul.bf16.vlgmr.msrb.gmra.mxu1 %v3896_v10  ;;  %v1261_v58 = vor.u32 %v1260_v49, %v1257_v43  ;;  %v3310_v10 = vld [vmem:[%s4644_s3 + $0xa8] sm:$0xff] }
  0xd9   : > { %v3986_v54 = vpack.c.bf16 %v603_v48, %v602_v46  ;;  %v442_v57 = vpop.f32.mrf.mxu0  ;;  %v4003_v47 = vsel %vm1899_vm13, %v1900_v55, %v1901_v59  ;;  %1102 = vmatpush.bf16.msrb.mxu3 %v3310_v10  ;;  %v3308_v46 = vld [vmem:[%s4644_s3 + $0x98] sm:$0xff]  ;;  %v579_v55 = vpop.permute.xlu2 %578 }
  0xda   : > { %v443_v60 = vadd.f32 %v3870_v53, %v442_v57  ;;  %v1262_v61 = vsel %vm1236_vm10, %v1252_v14, %v1261_v58  ;;  %v3340_v48 = vld [vmem:[%s4644_s3 + $0x158] sm:$0xff] }
  0xdb   : > { %3511 = vst [vmem:[#allocation2 + $0x20] sm:$0xff] %v3986_v54   ;;  %1377 = vmatmul.bf16.gmra.mxu0 %v1262_v61  ;;  %1767 = vmatpush.bf16.msrb.mxu2 %v3340_v48 }
  0xdc   : > { %v484_v62 = vmul.f32 0.01, %v443_v60  ;;  %vm469_vm14 = vcmp.ge.f32.partialorder %v443_v60, 0.0 }
  0xdd   : > { %1103 = vmatpush.bf16.msrb.mxu3 %v3309_v0 }
  0xde   : > { %v499_v5 = vsel %vm469_vm14, %v443_v60, %v484_v62 }
  0xdf   : > { %v604_v22 = vmul.f32 %v3874_v56, %v499_v5 }
  0xe1   : > { %v444_v1 = vpop.f32.mrf.mxu0  ;;  %1104 = vmatpush.bf16.msrb.mxu3 %v3308_v46 }
  0xe2   : > { %v445_v2 = vadd.f32 %v3870_v53, %v444_v1  ;;  %v4012_v3 = vld [vmem:[#allocation2 + $0x20] sm:$0xff] }
  0xe3   : > { %v3629_v4 = vld [vmem:[#allocation2 + $0x1c] sm:$0xff]   ;;  %987 = vmatmul.bf16.gmra.mxu2 %v4012_v3  ;;  %v767_v12 = vshll.u32 %v4012_v3, 16  ;;  %v1036_v26 = vrot.slane %v4012_v3, 1  ;;  %v771_v43 = vshrl.u32 %v4012_v3, 16  ;;  %v2427_v3 = vld [vmem:[%s4646_s5 + $0x10] sm:$0x3] }
  0xe4   : > { %vm470_vm15 = vcmp.ge.f32.partialorder %v445_v2, 0.0  ;;  %v485_v7 = vmul.f32 0.01, %v445_v2  ;;  %v1264_v13 = vshrl.u32 %v3629_v4, 16  ;;  %v1267_v14 = vshll.u32 %v3629_v4, 16  ;;  %v4017_v21 = vld [vmem:[#allocation2 + $0x1c] sm:$0xff]  }
  0xe5   : > { %v769_v18 = vrot.slane %v767_v12, 1  ;;  %v4026_v31 = vsel %vm1028_vm9, %v1034_v52, %v1036_v26  ;;  %v1903_v32 = vrot.slane %v4017_v21, 3 }
  0xe6   : > { %v500_v16 = vsel %vm470_vm15, %v445_v2, %v485_v7  ;;  %v1266_v19 = vrot.slane %v1264_v13, 3  ;;  %v1269_v24 = vrot.slane %v1267_v14, 4  ;;  %v3307_v2 = vld [vmem:[%s4644_s3 + $0x90] sm:$0xff] }
  0xe7   : > { %v605_v23 = vmul.f32 %v569_v15, %v500_v16  ;;  %v770_v25 = vsel %vm734_vm6, %v765_v17, %v769_v18  ;;  %v4036_v35 = vsel %vm1899_vm13, %v1901_v59, %v1903_v32  ;;  %v773_v60 = vor.u32 %v771_v43, %v769_v18  ;;  %1105 = vmatpush.bf16.msrb.mxu3 %v3307_v2  ;;  %v3339_v18 = vld [vmem:[%s4644_s3 + $0x150] sm:$0xff] }
  0xe8   : > { %877 = vmatmul.bf16.gmra.mxu3 %v770_v25  ;;  %972 = vmatmul.bf16.gmra.mxu1 %v3905_v20  ;;  %v1270_v29 = vor.u32 %v1269_v24, %v1266_v19  ;;  %v2479_v15 = vunpack.c.l.b16 %v2427_v3  ;;  %v3360_v3 = vld [vmem:[%s4644_s3 + $0x1f8] sm:$0xff]  ;;  %v2059_v20 = vshll.u32 %v3978_v39, 16 }
  0xe9   : > { %v4022_v27 = vpack.c.bf16 %v605_v23, %v604_v22  ;;  %v447_v28 = vpop.f32.mrf.mxu0  ;;  %1768 = vmatpush.bf16.msrb.mxu2 %v3339_v18  ;;  %v3338_v22 = vld [vmem:[%s4644_s3 + $0x148] sm:$0xff]  ;;  %2182 = vmatpush.bf16.msra.mxu0 %v3360_v3 }
  0xea   : > { %v448_v56 = vadd.f32 %v3870_v53, %v447_v28  ;;  %v1271_v33 = vsel %vm1236_vm10, %v1261_v58, %v1270_v29  ;;  %v574_v58 = vpop.permute.xlu1 %573  ;;  %v2482_v23 = vpack.c.b16 %v2479_v15, %v2479_v15 }
  0xeb   : > { %3512 = vst [vmem:[#allocation2 + $0x28] sm:$0xff] %v4022_v27   ;;  %1382 = vmatmul.bf16.gmra.mxu0 %v1271_v33 }
  0xec   : > { %v486_v36 = vmul.f32 0.01, %v448_v56  ;;  %vm471_vm2 = vcmp.ge.f32.partialorder %v448_v56, 0.0 }
  0xed   : > { %1769 = vmatpush.bf16.msrb.mxu2 %v3338_v22 }
  0xee   : > { %v501_v42 = vsel %vm471_vm2, %v448_v56, %v486_v36  ;;  %v2510_v56 = vsel %vm409_vm0, %v2482_v23, 0 }
  0xef   : > { %v606_v63 = vmul.f32 %v574_v58, %v501_v42  ;;  %v584_v42 = vpop.permute.xlu0 %583 }
  0xf1   : > { %v449_v37 = vpop.f32.mrf.mxu0 }
  0xf2   : > { %v450_v38 = vadd.f32 %v3870_v53, %v449_v37  ;;  %v4039_v40 = vld [vmem:[#allocation2 + $0x28] sm:$0xff]  ;;  %v589_v43 = vpop.permute.xlu1 %588 }
  0xf3   : > { %v3631_v41 = vld [vmem:[#allocation2 + $0x24] sm:$0xff]   ;;  %992 = vmatmul.bf16.gmra.mxu2 %v4039_v40  ;;  %v775_v50 = vshll.u32 %v4039_v40, 16  ;;  %v1038_v5 = vrot.slane %v4039_v40, 1  ;;  %v779_v34 = vshrl.u32 %v4039_v40, 16 }
  0xf4   : > { %vm472_vm3 = vcmp.ge.f32.partialorder %v450_v38, 0.0  ;;  %v487_v49 = vmul.f32 0.01, %v450_v38  ;;  %v1273_v52 = vshrl.u32 %v3631_v41, 16  ;;  %v1276_v57 = vshll.u32 %v3631_v41, 16  ;;  %v4050_v62 = vld [vmem:[#allocation2 + $0x24] sm:$0xff]  }
  0xf5   : > { %v777_v61 = vrot.slane %v775_v50, 1  ;;  %v4064_v13 = vsel %vm1028_vm9, %v1036_v26, %v1038_v5  ;;  %v1905_v14 = vrot.slane %v4050_v62, 3  ;;  %v3337_v26 = vld [vmem:[%s4644_s3 + $0x140] sm:$0xff] }
  0xf6   : > { %v502_v59 = vsel %vm472_vm3, %v450_v38, %v487_v49  ;;  %v1275_v10 = vrot.slane %v1273_v52, 3  ;;  %v1278_v1 = vrot.slane %v1276_v57, 4  ;;  %1770 = vmatpush.bf16.msrb.mxu2 %v3337_v26 }
  0xf7   : > { %v607_v0 = vmul.f32 %v579_v55, %v502_v59  ;;  %v778_v4 = vsel %vm734_vm6, %v773_v60, %v777_v61  ;;  %v4077_v19 = vsel %vm1899_vm13, %v1903_v32, %v1905_v14  ;;  %v781_v48 = vor.u32 %v779_v34, %v777_v61 }
  0xf8   : > { %882 = vmatmul.bf16.gmra.mxu3 %v778_v4  ;;  %1516 = vmatmul.bf16.vlgmr.msra.gmra.mxu1 %v3898_v11  ;;  %v1279_v12 = vor.u32 %v1278_v1, %v1275_v10  ;;  %v3306_v11 = vld [vmem:[%s4644_s3 + $0x88] sm:$0xff] }
  0xf9   : > { %v4060_v6 = vpack.c.bf16 %v607_v0, %v606_v63  ;;  %v452_v7 = vpop.f32.mrf.mxu0  ;;  %1106 = vmatpush.bf16.msrb.mxu3 %v3306_v11 }
  0xfa   : > { %v453_v16 = vadd.f32 %v3870_v53, %v452_v7  ;;  %v1280_v17 = vsel %vm1236_vm10, %v1270_v29, %v1279_v12  ;;  %2517 = vmatpush.bf16.msra.mxu2 %v2510_v56  ;;  %v594_v7 = vpop.permute.xlu2 %593 }
  0xfb   : > { %3513 = vst [vmem:[#allocation2 + $0x30] sm:$0xff] %v4060_v6   ;;  %1387 = vmatmul.bf16.gmra.mxu0 %v1280_v17  ;;  %v3358_v17 = vld [vmem:[%s4644_s3 + $0x1e8] sm:$0xff] }
  0xfc   : > { %v488_v24 = vmul.f32 0.01, %v453_v16  ;;  %vm473_vm4 = vcmp.ge.f32.partialorder %v453_v16, 0.0 }
  0xfe   : > { %v503_v33 = vsel %vm473_vm4, %v453_v16, %v488_v24 }
  0xff   : > { %v608_v57 = vmul.f32 %v584_v42, %v503_v33 }
 0x101   : > { %v454_v25 = vpop.f32.mrf.mxu0 }
 0x102   : > { %v455_v28 = vadd.f32 %v3870_v53, %v454_v25  ;;  %v4086_v29 = vld [vmem:[#allocation2 + $0x30] sm:$0xff] }
 0x103   : > { %v3633_v32 = vld [vmem:[#allocation2 + $0x2c] sm:$0xff]   ;;  %997 = vmatmul.bf16.gmra.mxu2 %v4086_v29  ;;  %v783_v37 = vshll.u32 %v4086_v29, 16  ;;  %v1040_v59 = vrot.slane %v4086_v29, 1 }
 0x104   : > { %vm474_vm5 = vcmp.ge.f32.partialorder %v455_v28, 0.0  ;;  %v489_v36 = vmul.f32 0.01, %v455_v28  ;;  %v1282_v38 = vshrl.u32 %v3633_v32, 16  ;;  %v1285_v41 = vshll.u32 %v3633_v32, 16  ;;  %v4092_v52 = vld [vmem:[#allocation2 + $0x2c] sm:$0xff]  }
 0x105   : > { %v785_v49 = vrot.slane %v783_v37, 1  ;;  %v4101_v0 = vsel %vm1028_vm9, %v1038_v5, %v1040_v59  ;;  %v1907_v1 = vrot.slane %v4092_v52, 3  ;;  %v3359_v5 = vld [vmem:[%s4644_s3 + $0x1f0] sm:$0xff] }
 0x106   : > { %v504_v46 = vsel %vm474_vm5, %v455_v28, %v489_v36  ;;  %v1284_v50 = vrot.slane %v1282_v38, 3  ;;  %v1287_v58 = vrot.slane %v1285_v41, 4  ;;  %2183 = vmatpush.bf16.msra.mxu0 %v3359_v5  ;;  %v787_v36 = vshrl.u32 %v4086_v29, 16  ;;  %v3357_v38 = vld [vmem:[%s4644_s3 + $0x1e0] sm:$0xff] }
 0x107   : > { %v609_v40 = vmul.f32 %v589_v43, %v504_v46  ;;  %v786_v55 = vsel %vm734_vm6, %v781_v48, %v785_v49  ;;  %v3329_v43 = vld [vmem:[#allocation2 + $0x8] sm:$0xff] }
 0x108   : > { %887 = vmatmul.bf16.gmra.mxu3 %v786_v55  ;;  %1521 = vmatmul.bf16.gmra.mxu1 %v3911_v30  ;;  %v1288_v63 = vor.u32 %v1287_v58, %v1284_v50  ;;  %v4113_v30 = vsel %vm1899_vm13, %v1905_v14, %v1907_v1  ;;  %v1841_v48 = vld [vmem:[#allocation2 + $0x48] sm:$0x7]  ;;  %v789_v50 = vor.u32 %v787_v36, %v785_v49  ;;  %v3330_v58 = vld [vmem:[#allocation2 + $0x10] sm:$0xff] }
 0x109   : > { %v4096_v60 = vpack.c.bf16 %v609_v40, %v608_v57  ;;  %v457_v10 = vpop.f32.mrf.mxu0 }
 0x10a   : > { %v458_v61 = vadd.f32 %v3870_v53, %v457_v10  ;;  %v1289_v2 = vsel %vm1236_vm10, %v1279_v12, %v1288_v63  ;;  %v3305_v53 = vld [vmem:[%s4644_s3 + $0x80] sm:$0xff]  ;;  %2184 = vmatpush.bf16.msra.mxu0 %v3358_v17 }
 0x10b   : > { %3514 = vst [vmem:[#allocation2 + $0x38] sm:$0xff] %v4096_v60   ;;  %1392 = vmatmul.bf16.gmra.mxu0 %v1289_v2  ;;  %1107 = vmatpush.bf16.msrb.mxu3 %v3305_v53 }
 0x10c   : > { %vm475_vm0 = vcmp.ge.f32.partialorder %v458_v61, 0.0  ;;  %v490_v4 = vmul.f32 0.01, %v458_v61 }
 0x10e   : > { %v505_v12 = vsel %vm475_vm0, %v458_v61, %v490_v4  ;;  %2185 = vmatpush.bf16.msra.mxu0 %v3357_v38  ;;  %v1890_v4 = vunpack.c.l.b16 %v1841_v48 }
 0x10f   : > { %v610_v15 = vmul.f32 %v594_v7, %v505_v12  ;;  %v1652_v7 = vshll.u32 %v3330_v58, 16  ;;  %v3355_v12 = vld [vmem:[%s4644_s3 + $0x1d0] sm:$0xff] }
 0x111   : > { %v629_v16 = vpack.c.bf16 %v610_v15, %v610_v15  ;;  %v459_v18 = vpop.f32.mrf.mxu0  ;;  %v3368_v15 = vld [vmem:[%s4644_s3 + $0x238] sm:$0xff] }
 0x112   : > { %v659_v11 = vld [vmem:[#allocation2 + $0x38] sm:$0xf]  ;;  %v676_v22 = vld [vmem:[#allocation2 + $0x3c] sm:$0x1]  ;;  %2326 = vmatpush.bf16.msrb.mxu1 %v3368_v15 }
 0x113   : > { %v3634_v14 = vld [vmem:[#allocation2 + $0x34] sm:$0xff]   ;;  %644 = vst [vmem:[#allocation2 + $0x40] sm:$0xf] %v629_v16  ;;  %v724_v23 = vunpack.c.l.b16 %v659_v11  ;;  %v725_v24 = vunpack.c.l.b16 %v676_v22 }
 0x114   : > { %v1291_v25 = vshrl.u32 %v3634_v14, 16  ;;  %v1294_v26 = vshll.u32 %v3634_v14, 16  ;;  %v4121_v28 = vld [vmem:[#allocation2 + $0x34] sm:$0xff]  }
 0x115   : > { %v4123_v32 = vpack.c.b16 %v725_v24, %v724_v23  ;;  %v902_v56 = vpack.c.b16 %v724_v23, %v724_v23  ;;  %v1909_v46 = vrot.slane %v4121_v28, 3  ;;  %v1645_v23 = vshrl.u32 %v3329_v43, 16 }
 0x116   : > { %v1293_v33 = vrot.slane %v1291_v25, 3  ;;  %v1296_v34 = vrot.slane %v1294_v26, 4  ;;  %v1654_v24 = vrot.slane %v1652_v7, 1  ;;  %v3354_v25 = vld [vmem:[%s4644_s3 + $0x1c8] sm:$0xff] }
 0x117   : > { %1002 = vmatmul.bf16.gmra.mxu2 %v902_v56  ;;  %v791_v37 = vshll.u32 %v4123_v32, 16  ;;  %v1042_v41 = vrot.slane %v4123_v32, 1  ;;  %v4142_v61 = vsel %vm1899_vm13, %v1907_v1, %v1909_v46  ;;  %v3356_v1 = vld [vmem:[%s4644_s3 + $0x1d8] sm:$0xff] }
 0x118   : > { %v1297_v42 = vor.u32 %v1296_v34, %v1293_v33  ;;  %1526 = vmatmul.bf16.gmra.mxu1 %v3946_v9  ;;  %v3444_v9 = vunpack.c.h.b16 %v4096_v60  ;;  %2186 = vmatpush.bf16.msra.mxu0 %v3356_v1 }
 0x119   : > { %v793_v57 = vrot.slane %v791_v37, 1  ;;  %v4136_v29 = vsel %vm1028_vm9, %v1040_v59, %v1042_v41  ;;  %v1647_v59 = vshll.u32 %v3329_v43, 16  ;;  %v795_v43 = vshrl.u32 %v4123_v32, 16 }
 0x11a   : > { %v1298_v40 = vsel %vm1236_vm10, %v1288_v63, %v1297_v42  ;;  %v1178_v55 = vld [vmem:[#allocation2 + $0x40] sm:$0xf]  ;;  %v3352_v63 = vld [vmem:[%s4644_s3 + $0x1b8] sm:$0xff] }
 0x11b   : > { %v4139_v10 = vld [vmem:[#allocation2 + $0x3c] sm:$0xff]   ;;  %v794_v2 = vsel %vm734_vm6, %v789_v50, %v793_v57  ;;  %v4146_v49 = vunpack.c.l.b16 %v1178_v55  ;;  %1397 = vmatmul.bf16.gmra.mxu0 %v1298_v40  ;;  %1971 = vmatpush.bf16.msra.mxu3 %v3352_v63  ;;  %v1649_v22 = vrot.slane %v1647_v59, 1  ;;  %v797_v48 = vor.u32 %v795_v43, %v793_v57  ;;  %v3351_v55 = vld [vmem:[%s4644_s3 + $0x1b0] sm:$0xff] }
 0x11c   : > { %v4148_v3 = vld [vmem:[#allocation2 + $0x40] sm:$0xff]   ;;  %892 = vmatmul.bf16.gmra.mxu3 %v794_v2  ;;  %v1911_v16 = vrot.slane %v4139_v10, 3  ;;  %2187 = vmatpush.bf16.msra.mxu0 %v3355_v12  ;;  %v3331_v50 = vld [vmem:[#allocation2 + $0x18] sm:$0xff]  ;;  %v3367_v59 = vld [vmem:[%s4644_s3 + $0x230] sm:$0xff] }
 0x11d   : > { %v3472_v53 = vunpack.c.h.b16 %v4148_v3  ;;  %v1235_v5 = vpack.c.b16 %v4146_v49, %v3444_v9  ;;  %v1650_v34 = vor.u32 %v1649_v22, %v1645_v23  ;;  %v1660_v2 = vshll.u32 %v3331_v50, 16  ;;  %v3515_v9 = vld [vmem:[#allocation2] sm:$0xf0]  ;;  %2327 = vmatpush.bf16.msrb.mxu1 %v3367_v59 }
 0x11e   : > { %v4170_v14 = vsel %vm1899_vm13, %v1909_v46, %v1911_v16  ;;  %v3353_v46 = vld [vmem:[%s4644_s3 + $0x1c0] sm:$0xff]  ;;  %v2067_v22 = vshll.u32 %v3980_v44, 16  ;;  %v1664_v23 = vshrl.u32 %v3331_v50, 16 }
 0x11f   : > { %v1300_v17 = vshrl.u32 %v1235_v5, 16  ;;  %v1303_v18 = vshll.u32 %v1235_v5, 16  ;;  %v4167_v11 = vpack.c.b16 %v1890_v4, %v3472_v53  ;;  %v1655_v37 = vsel %vm734_vm6, %v1650_v34, %v1654_v24  ;;  %1972 = vmatpush.bf16.msra.mxu3 %v3351_v55  ;;  %v3516_v4 = vld [vmem:[#allocation2] sm:$0xe]  ;;  %v3364_v55 = vld [vmem:[%s4644_s3 + $0x218] sm:$0xff] }
 0x120   : > { %2188 = vmatpush.bf16.msra.mxu0 %v3354_v25  ;;  %v1662_v57 = vrot.slane %v1660_v2, 1  ;;  %v3517_v63 = vor.u32 %v3516_v4, %v3515_v9  ;;  %v3332_v12 = vld [vmem:[#allocation2 + $0x20] sm:$0xff] }
 0x121   : > { %v4650_v26 = vrot.slane %v4167_v11, 3  ;;  %v1302_v56 = vrot.slane %v1300_v17, 3  ;;  %v1305_v33 = vrot.slane %v1303_v18, 4  ;;  %v1668_v17 = vshll.u32 %v3332_v12, 16  ;;  %v3349_v9 = vld [vmem:[%s4644_s3 + $0x1a0] sm:$0xff] }
 0x122   : > { %v1029_v7 = vrot.slane %v3517_v63, 1  ;;  %v2064_v18 = vshrl.u32 %v3980_v44, 16  ;;  %v2076_v63 = vshll.u32 %v4017_v21, 16 }
 0x123   : > { %v4179_v36 = vsel %vm1899_vm13, %v1911_v16, %v4650_v26  ;;  %v1306_v38 = vor.u32 %v1305_v33, %v1302_v56  ;;  %v2069_v56 = vrot.slane %v2067_v22, 4  ;;  %v1666_v33 = vor.u32 %v1664_v23, %v1662_v57 }
 0x124   : > { %2189 = vmatpush.bf16.msra.mxu0 %v3353_v46  ;;  %v1031_v15 = vsel %vm1028_vm9, %v1029_v7, %v1030_v51  ;;  %v3366_v51 = vld [vmem:[%s4644_s3 + $0x228] sm:$0xff]  ;;  %v2066_v25 = vrot.slane %v2064_v18, 3 }
 0x125   : > { %v1307_v40 = vsel %vm1236_vm10, %v1297_v42, %v1306_v38  ;;  %2328 = vmatpush.bf16.msrb.mxu1 %v3366_v51 }
 0x126   : > { %v2070_v46 = vor.u32 %v2069_v56, %v2066_v25  ;;  %v3334_v25 = vld [vmem:[#allocation2 + $0x30] sm:$0xff]  ;;  %v3348_v56 = vld [vmem:[%s4644_s3 + $0x198] sm:$0xff] }
 0x127   : > { %1771 = vmatmul.bf16.vlgmr.msrb.gmra.mxu2 %v1655_v37  ;;  %v2061_v37 = vrot.slane %v2059_v20, 4 }
 0x128   : > { %1531 = vmatmul.bf16.gmra.mxu1 %v3986_v54  ;;  %v1656_v54 = vshrl.u32 %v3330_v58, 16  ;;  %v3350_v58 = vld [vmem:[%s4644_s3 + $0x1a8] sm:$0xff] }
 0x129   : > { %1973 = vmatpush.bf16.msra.mxu3 %v3350_v58 }
 0x12a   : > { %v1658_v1 = vor.u32 %v1656_v54, %v1654_v24  ;;  %v1670_v24 = vrot.slane %v1668_v17, 1  ;;  %v2078_v17 = vrot.slane %v2076_v63, 4 }
 0x12b   : > { %1402 = vmatmul.bf16.gmra.mxu0 %v1307_v40  ;;  %v3333_v40 = vld [vmem:[#allocation2 + $0x28] sm:$0xff] }
 0x12c   : > { %897 = vmatmul.bf16.gmra.mxu3 %v797_v48  ;;  %v1663_v5 = vsel %vm734_vm6, %v1658_v1, %v1662_v57  ;;  %v1671_v44 = vsel %vm734_vm6, %v1666_v33, %v1670_v24  ;;  %v1676_v59 = vshll.u32 %v3333_v40, 16  ;;  %v2073_v57 = vshrl.u32 %v4017_v21, 16 }
 0x12d   : > { %1974 = vmatpush.bf16.msra.mxu3 %v3349_v9 }
 0x12e   : > { %v1678_v7 = vrot.slane %v1676_v59, 1  ;;  %v2075_v58 = vrot.slane %v2073_v57, 3 }
 0x130   : > { %v2079_v51 = vor.u32 %v2078_v17, %v2075_v58  ;;  %v3335_v58 = vld [vmem:[#allocation2 + $0x38] sm:$0xff] }
 0x131   : > { %1975 = vmatpush.bf16.msra.mxu3 %v3348_v56 }
 0x135   : > { %v4194_v42 = vpop.f32.mrf.mxu1 }
 0x137   : > { %1776 = vmatmul.bf16.gmra.mxu2 %v1663_v5  ;;  %v1672_v5 = vshrl.u32 %v3332_v12, 16  ;;  %v3361_v12 = vld [vmem:[%s4644_s3 + $0x200] sm:$0xff] }
 0x138   : > { %1536 = vmatmul.bf16.gmra.mxu1 %v4022_v27  ;;  %v2056_v27 = vshrl.u32 %v3978_v39, 16  ;;  %v3365_v39 = vld [vmem:[%s4644_s3 + $0x220] sm:$0xff] }
 0x139   : > { %2329 = vmatpush.bf16.msrb.mxu1 %v3365_v39  ;;  %v1674_v18 = vor.u32 %v1672_v5, %v1670_v24  ;;  %v2080_v24 = vsel %vm1236_vm10, %v2070_v46, %v2079_v51 }
 0x13a   : > { %v2058_v34 = vrot.slane %v2056_v27, 3 }
 0x13b   : > { %1407 = vmatmul.bf16.gmra.mxu0 %v1306_v38  ;;  %v1679_v21 = vsel %vm734_vm6, %v1674_v18, %v1678_v7 }
 0x13c   : > { %1108 = vmatmul.bf16.vlgmr.msrb.gmra.mxu3 %v1031_v15  ;;  %v2062_v50 = vor.u32 %v2061_v37, %v2058_v34  ;;  %v3362_v15 = vld [vmem:[%s4644_s3 + $0x208] sm:$0xff]  ;;  %v1684_v37 = vshll.u32 %v3334_v25, 16 }
 0x13d   : > { %v4204_v16 = vpop.f32.mrf.mxu1  ;;  %2330 = vmatpush.bf16.msrb.mxu1 %v3364_v55  ;;  %v1680_v55 = vshrl.u32 %v3333_v40, 16 }
 0x13e   : > { %v2071_v2 = vsel %vm1236_vm10, %v2062_v50, %v2070_v46  ;;  %v2082_v50 = vshrl.u32 %v4050_v62, 16  ;;  %v2085_v46 = vshll.u32 %v4050_v62, 16  ;;  %v1451_v62 = vpack.c.b16 %v4146_v49, %v4146_v49 }
 0x140   : > { %v2084_v9 = vrot.slane %v2082_v50, 3 }
 0x145   : > { %v4213_v38 = vpop.f32.mrf.mxu1 }
 0x146   : > { %v978_v43 = vpop.f32.mrf.mxu2 }
 0x147   : > { %1781 = vmatmul.bf16.gmra.mxu2 %v1671_v44 }
 0x148   : > { %v4219_v48 = vpop.f32.mrf.mxu0  ;;  %1541 = vmatmul.bf16.gmra.mxu1 %v4060_v6  ;;  %v3377_v6 = vld [vmem:[%s4646_s5 + $0x8] sm:$0xff] }
 0x149   : > { %2518 = vmatpush.bf16.msra.mxu2 %v3377_v6  ;;  %v2087_v6 = vrot.slane %v2085_v46, 4 }
 0x14b   : > { %2190 = vmatmul.bf16.vlgmr.msra.gmra.mxu0 %v2071_v2  ;;  %v1686_v2 = vrot.slane %v1684_v37, 1 }
 0x14c   : > { %1113 = vmatmul.bf16.gmra.mxu3 %v3944_v8  ;;  %v3363_v8 = vld [vmem:[%s4644_s3 + $0x210] sm:$0xff] }
 0x14d   : > { %v4233_v4 = vpop.f32.mrf.mxu1  ;;  %2331 = vmatpush.bf16.msrb.mxu1 %v3363_v8 }
 0x14e   : > { %v980_v54 = vpop.f32.mrf.mxu2 }
 0x150   : > { %v4240_v1 = vpop.f32.mrf.mxu0 }
 0x151   : > { %2332 = vmatpush.bf16.msrb.mxu1 %v3362_v15  ;;  %v2088_v15 = vor.u32 %v2087_v6, %v2084_v9  ;;  %v3050_v6 = vld [vmem:[#allocation2 + $0x40] sm:$0xf] }
 0x155   : > { %v968_v22 = vpop.f32.mrf.mxu1  ;;  %2333 = vmatpush.bf16.msrb.mxu1 %v3361_v12  ;;  %v2091_v12 = vshrl.u32 %v4092_v52, 16 }
 0x156   : > { %v4247_v27 = vadd.f32 %v968_v22, %v4194_v42  ;;  %v983_v20 = vpop.f32.mrf.mxu2  ;;  %v1692_v22 = vshll.u32 %v3335_v58, 16 }
 0x157   : > { %1786 = vmatmul.bf16.gmra.mxu2 %v1679_v21  ;;  %v2093_v56 = vrot.slane %v2091_v12, 3 }
 0x158   : > { %v4252_v23 = vpop.f32.mrf.mxu0  ;;  %1546 = vmatmul.bf16.gmra.mxu1 %v4096_v60 }
 0x15b   : > { %2195 = vmatmul.bf16.gmra.mxu0 %v2080_v24  ;;  %v873_v42 = vpop.f32.mrf.mxu3  ;;  %v1688_v24 = vshrl.u32 %v3334_v25, 16  ;;  %v3525_v25 = vld [vmem:[#allocation2 + $0x10] sm:$0xff]  }
 0x15c   : > { %1118 = vmatmul.bf16.gmra.mxu3 %v3992_v45  ;;  %v4260_v33 = vadd.f32 %v978_v43, %v873_v42  ;;  %v1682_v43 = vor.u32 %v1680_v55, %v1678_v7  ;;  %v2089_v7 = vsel %vm1236_vm10, %v2079_v51, %v2088_v15  ;;  %v2094_v51 = vshll.u32 %v4092_v52, 16  ;;  %v3376_v52 = vld [vmem:[%s4646_s5] sm:$0xff] }
 0x15d   : > { %v970_v34 = vpop.f32.mrf.mxu1  ;;  %v1694_v42 = vrot.slane %v1692_v22, 1  ;;  %2519 = vmatpush.bf16.msra.mxu2 %v3376_v52  ;;  %v2103_v22 = vshll.u32 %v4121_v28, 16 }
 0x15e   : > { %v4263_v44 = vadd.f32 %v970_v34, %v4204_v16  ;;  %v985_v39 = vpop.f32.mrf.mxu2  ;;  %v1687_v8 = vsel %vm734_vm6, %v1682_v43, %v1686_v2  ;;  %v2096_v34 = vrot.slane %v2094_v51, 4 }
 0x160   : > { %v4267_v45 = vpop.f32.mrf.mxu0  ;;  %v2097_v9 = vor.u32 %v2096_v34, %v2093_v56 }
 0x163   : > { %v875_v59 = vpop.f32.mrf.mxu3 }
 0x164   : > { %v4269_v57 = vadd.f32 %v980_v54, %v875_v59  ;;  %v3336_v59 = vld [vmem:[#allocation2 + $0x40] sm:$0x10] }
 0x165   : > { %v973_v63 = vpop.f32.mrf.mxu1 }
 0x166   : > { %v4273_v16 = vadd.f32 %v973_v63, %v4213_v38  ;;  %v988_v5 = vpop.f32.mrf.mxu2  ;;  %v3347_v38 = vld [vmem:[%s4644_s3 + $0x190] sm:$0xff] }
 0x167   : > { %1791 = vmatmul.bf16.gmra.mxu2 %v1687_v8  ;;  %1976 = vmatpush.bf16.msra.mxu3 %v3347_v38  ;;  %v3346_v8 = vld [vmem:[%s4644_s3 + $0x188] sm:$0xff] }
 0x168   : > { %v4277_v40 = vpop.f32.mrf.mxu0  ;;  %1551 = vmatmul.bf16.gmra.mxu1 %v1451_v62 }
 0x16b   : > { %2200 = vmatmul.bf16.gmra.mxu0 %v2089_v7  ;;  %v878_v54 = vpop.f32.mrf.mxu3  ;;  %1977 = vmatpush.bf16.msra.mxu3 %v3346_v8 }
 0x16c   : > { %1123 = vmatmul.bf16.gmra.mxu3 %v4026_v31  ;;  %v4284_v17 = vadd.f32 %v983_v20, %v878_v54  ;;  %v1690_v20 = vor.u32 %v1688_v24, %v1686_v2  ;;  %v2098_v2 = vsel %vm1236_vm10, %v2088_v15, %v2097_v9  ;;  %v2105_v24 = vrot.slane %v2103_v22, 4 }
 0x16d   : > { %v975_v18 = vpop.f32.mrf.mxu1 }
 0x16e   : > { %v4287_v49 = vadd.f32 %v975_v18, %v4233_v4  ;;  %v990_v21 = vpop.f32.mrf.mxu2  ;;  %v1695_v4 = vsel %vm734_vm6, %v1690_v20, %v1694_v42  ;;  %v2100_v18 = vshrl.u32 %v4121_v28, 16 }
 0x170   : > { %v4291_v31 = vpop.f32.mrf.mxu0  ;;  %v2102_v51 = vrot.slane %v2100_v18, 3 }
 0x173   : > { %v880_v37 = vpop.f32.mrf.mxu3 }
 0x174   : > { %v4293_v50 = vadd.f32 %v985_v39, %v880_v37  ;;  %v3051_v39 = vor.u32 %v3336_v59, %v3050_v6  ;;  %v3526_v59 = vld [vmem:[#allocation2 + $0x18] sm:$0xff]  }
 0x175   : > { %v4295_v46 = vpop.f32.mrf.mxu1 }
 0x176   : > { %v993_v55 = vpop.f32.mrf.mxu2  ;;  %v1700_v54 = vshll.u32 %v3051_v39, 16 }
 0x177   : > { %1796 = vmatmul.bf16.gmra.mxu2 %v1695_v4  ;;  %v2106_v4 = vor.u32 %v2105_v24, %v2102_v51 }
 0x178   : > { %v4301_v43 = vpop.f32.mrf.mxu0  ;;  %2334 = vmatmul.bf16.vlgmr.msrb.gmra.mxu1 %v3525_v25  ;;  %v1702_v12 = vrot.slane %v1700_v54, 1  ;;  %v1704_v54 = vshrl.u32 %v3051_v39, 16 }
 0x179   : > { %v2107_v28 = vsel %vm1236_vm10, %v2097_v9, %v2106_v4 }
 0x17a   : > { %v1706_v24 = vor.u32 %v1704_v54, %v1702_v12 }
 0x17b   : > { %2205 = vmatmul.bf16.gmra.mxu0 %v2098_v2  ;;  %v883_v63 = vpop.f32.mrf.mxu3  ;;  %v2109_v2 = vshrl.u32 %v4139_v10, 16 }
 0x17c   : > { %1128 = vmatmul.bf16.gmra.mxu3 %v4064_v13  ;;  %v4308_v62 = vadd.f32 %v988_v5, %v883_v63  ;;  %v1696_v13 = vshrl.u32 %v3335_v58, 16  ;;  %v2112_v63 = vshll.u32 %v4139_v10, 16 }
 0x17d   : > { %v4310_v7 = vpop.f32.mrf.mxu1 }
 0x17e   : > { %v995_v38 = vpop.f32.mrf.mxu2  ;;  %v1698_v34 = vor.u32 %v1696_v13, %v1694_v42  ;;  %v2114_v18 = vrot.slane %v2112_v63, 4  ;;  %v2034_v13 = vld [vmem:[#allocation2 + $0x48] sm:$0xf] }
 0x180   : > { %v4314_v15 = vpop.f32.mrf.mxu0  ;;  %v1703_v20 = vsel %vm734_vm6, %v1698_v34, %v1702_v12  ;;  %v4340_v34 = vunpack.c.l.b16 %v2034_v13 }
 0x183   : > { %v885_v56 = vpop.f32.mrf.mxu3 }
 0x184   : > { %v4316_v37 = vadd.f32 %v990_v21, %v885_v56  ;;  %v3345_v21 = vld [vmem:[%s4644_s3 + $0x180] sm:$0xff] }
 0x185   : > { %v4318_v5 = vpop.f32.mrf.mxu1  ;;  %1978 = vmatpush.bf16.msra.mxu3 %v3345_v21 }
 0x186   : > { %v998_v6 = vpop.f32.mrf.mxu2 }
 0x187   : > { %1801 = vmatmul.bf16.gmra.mxu2 %v1703_v20  ;;  %v3527_v20 = vld [vmem:[#allocation2 + $0x20] sm:$0xff]  }
 0x188   : > { %v4321_v52 = vpop.f32.mrf.mxu0  ;;  %2339 = vmatmul.bf16.gmra.mxu1 %v3526_v59 }
 0x18b   : > { %2210 = vmatmul.bf16.gmra.mxu0 %v2107_v28  ;;  %v888_v58 = vpop.f32.mrf.mxu3 }
 0x18c   : > { %1133 = vmatmul.bf16.gmra.mxu3 %v4101_v0  ;;  %v4328_v42 = vadd.f32 %v993_v55, %v888_v58  ;;  %v2111_v0 = vrot.slane %v2109_v2, 3 }
 0x18d   : > { %v4330_v25 = vpop.f32.mrf.mxu1 }
 0x18e   : > { %v1000_v9 = vpop.f32.mrf.mxu2  ;;  %v2115_v56 = vor.u32 %v2114_v18, %v2111_v0 }
 0x190   : > { %v4334_v8 = vpop.f32.mrf.mxu0  ;;  %v2116_v39 = vsel %vm1236_vm10, %v2106_v4, %v2115_v56  ;;  %v3369_v4 = vld [vmem:[%s3759_s26] sm:$0xff] }
 0x193   : > { %v890_v22 = vpop.f32.mrf.mxu3 }
 0x194   : > { %v4336_v51 = vadd.f32 %v995_v38, %v890_v22  ;;  %v2054_v38 = vpack.c.b16 %v4340_v34, %v3472_v53 }
 0x195   : > { %v4338_v55 = vpop.f32.mrf.mxu1 }
 0x196   : > { %v2118_v58 = vshrl.u32 %v2054_v38, 16  ;;  %v2121_v21 = vshll.u32 %v2054_v38, 16 }
 0x197   : > { %1806 = vmatmul.bf16.gmra.mxu2 %v1706_v24  ;;  %v3528_v24 = vld [vmem:[#allocation2 + $0x28] sm:$0xff]  }
 0x198   : > { %v4342_v59 = vpop.f32.mrf.mxu0  ;;  %2344 = vmatmul.bf16.gmra.mxu1 %v3527_v20  ;;  %v2120_v0 = vrot.slane %v2118_v58, 3  ;;  %v2123_v18 = vrot.slane %v2121_v21, 4 }
 0x19a   : > { %v1003_v10 = vpop.f32.mrf.mxu2  ;;  %v2124_v53 = vor.u32 %v2123_v18, %v2120_v0 }
 0x19b   : > { %2215 = vmatmul.bf16.gmra.mxu0 %v2116_v39 }
 0x19c   : > { %1138 = vmatmul.bf16.gmra.mxu3 %v4136_v29  ;;  %v2125_v39 = vsel %vm1236_vm10, %v2115_v56, %v2124_v53  ;;  %v3529_v56 = vld [vmem:[#allocation2 + $0x30] sm:$0xff]  }
 0x19d   : > { %v4349_v12 = vpop.f32.mrf.mxu1 }
 0x19f   : > { %v893_v28 = vpop.f32.mrf.mxu3 }
 0x1a0   : > { %v4351_v2 = vadd.f32 %v998_v6, %v893_v28  ;;  %v4353_v63 = vpop.f32.mrf.mxu0 }
 0x1a2   : > { %v1005_v54 = vpop.f32.mrf.mxu2 }
 0x1a3   : > { %v3370_v54 = vld [vmem:[%s3759_s26 + $0x8] sm:$0xff] }
 0x1a5   : > { %v4356_v22 = vpop.f32.mrf.mxu1 }
 0x1a7   : > { %v895_v13 = vpop.f32.mrf.mxu3  ;;  %3264 = vmatmul.msk.bf16.vlgmr.msra.gmra.mxu2 %vm384_vm1, %v3369_v4 }
 0x1a8   : > { %v4359_v29 = vadd.f32 %v1000_v9, %v895_v13  ;;  %v4361_v20 = vpop.f32.mrf.mxu0  ;;  %2349 = vmatmul.bf16.gmra.mxu1 %v3528_v24 }
 0x1aa   : > { %v1772_v6 = vpop.f32.mrf.mxu2 }
 0x1ab   : > { %2220 = vmatmul.bf16.gmra.mxu0 %v2125_v39 }
 0x1ac   : > { %1143 = vmatmul.bf16.gmra.mxu3 %v1042_v41 }
 0x1ad   : > { %v4366_v38 = vpop.f32.mrf.mxu1 }
 0x1af   : > { %v898_v28 = vpop.f32.mrf.mxu3 }
 0x1b0   : > { %v4368_v58 = vadd.f32 %v1003_v10, %v898_v28  ;;  %v4370_v21 = vpop.f32.mrf.mxu0 }
 0x1b2   : > { %v1774_v9 = vpop.f32.mrf.mxu2 }
 0x1b5   : > { %v4373_v0 = vpop.f32.mrf.mxu1 }
 0x1b7   : > { %v900_v18 = vpop.f32.mrf.mxu3  ;;  %3265 = vmatmul.msk.bf16.gmra.mxu2 %vm384_vm1, %v3370_v54 }
 0x1b8   : > { %v4376_v4 = vpop.f32.mrf.mxu0  ;;  %2354 = vmatmul.bf16.gmra.mxu1 %v3529_v56  ;;  %v3371_v18 = vld [vmem:[%s3759_s26 + $0x10] sm:$0xff] }
 0x1b9   : > { %4651 = vst [vmem:[#allocation3_spill] sm:$0xff] %v4376_v4 }
 0x1ba   : > { %v1777_v32 = vpop.f32.mrf.mxu2 }
 0x1bb   : > { %2225 = vmatmul.bf16.gmra.mxu0 %v2124_v53 }
 0x1bc   : > { %1979 = vmatmul.bf16.vlgmr.msra.gmra.mxu3 %v4003_v47 }
 0x1bd   : > { %v4379_v41 = vpop.f32.mrf.mxu1 }
 0x1bf   : > { %v1109_v10 = vpop.f32.mrf.mxu3 }
 0x1c0   : > { %v1148_v13 = vadd.f32 %v1109_v10, %v4247_v27  ;;  %v1410_v24 = vpop.f32.mrf.mxu0 }
 0x1c2   : > { %v1412_v39 = vadd.f32 %v4219_v48, %v1148_v13  ;;  %v1779_v28 = vpop.f32.mrf.mxu2 }
 0x1c4   : > { %v1556_v54 = vadd.f32 %v4295_v46, %v1412_v39 }
 0x1c5   : > { %v4385_v26 = vpop.f32.mrf.mxu1 }
 0x1c6   : > { %v4387_v4 = vadd.f32 %v1772_v6, %v1556_v54 }
 0x1c7   : > { %v1111_v56 = vpop.f32.mrf.mxu3  ;;  %3266 = vmatmul.msk.bf16.gmra.mxu2 %vm384_vm1, %v3371_v18 }
 0x1c8   : > { %v1149_v47 = vadd.f32 %v1111_v56, %v4263_v44  ;;  %v4391_v53 = vpop.f32.mrf.mxu0  ;;  %2359 = vmatmul.bf16.gmra.mxu1 %v4096_v60  ;;  %v3372_v60 = vld [vmem:[%s3759_s26 + $0x18] sm:$0xff] }
 0x1ca   : > { %v1413_v48 = vadd.f32 %v4240_v1, %v1149_v47  ;;  %v1782_v27 = vpop.f32.mrf.mxu2 }
 0x1cc   : > { %1984 = vmatmul.bf16.gmra.mxu3 %v4036_v35  ;;  %v1557_v46 = vadd.f32 %v4310_v7, %v1413_v48 }
 0x1cd   : > { %v4397_v10 = vpop.f32.mrf.mxu1 }
 0x1ce   : > { %v4399_v6 = vadd.f32 %v1774_v9, %v1557_v46 }
 0x1cf   : > { %v1114_v13 = vpop.f32.mrf.mxu3 }
 0x1d0   : > { %v1150_v24 = vadd.f32 %v1114_v13, %v4273_v16  ;;  %v4402_v39 = vpop.f32.mrf.mxu0 }
 0x1d2   : > { %v1414_v44 = vadd.f32 %v4252_v23, %v1150_v24  ;;  %v1784_v18 = vpop.f32.mrf.mxu2 }
 0x1d4   : > { %v1558_v1 = vadd.f32 %v4318_v5, %v1414_v44 }
 0x1d5   : > { %v4407_v54 = vpop.f32.mrf.mxu1 }
 0x1d6   : > { %v4409_v35 = vadd.f32 %v1777_v32, %v1558_v1 }
 0x1d7   : > { %v1116_v7 = vpop.f32.mrf.mxu3  ;;  %3267 = vmatmul.msk.bf16.gmra.mxu2 %vm384_vm1, %v3372_v60 }
 0x1d8   : > { %v1151_v9 = vadd.f32 %v1116_v7, %v4287_v49  ;;  %v4413_v56 = vpop.f32.mrf.mxu0  ;;  %2364 = vmatmul.bf16.gmra.mxu1 %v4148_v3  ;;  %v3373_v3 = vld [vmem:[%s3759_s26 + $0x20] sm:$0xff] }
 0x1da   : > { %v1415_v23 = vadd.f32 %v4267_v45, %v1151_v9  ;;  %v1787_v16 = vpop.f32.mrf.mxu2 }
 0x1dc   : > { %1989 = vmatmul.bf16.gmra.mxu3 %v4077_v19  ;;  %v1559_v5 = vadd.f32 %v4330_v25, %v1415_v23 }
 0x1dd   : > { %v4419_v47 = vpop.f32.mrf.mxu1 }
 0x1de   : > { %v4421_v32 = vadd.f32 %v1779_v28, %v1559_v5 }
 0x1df   : > { %v1119_v48 = vpop.f32.mrf.mxu3 }
 0x1e0   : > { %v1152_v46 = vadd.f32 %v1119_v48, %v4260_v33  ;;  %v4424_v13 = vpop.f32.mrf.mxu0  ;;  %v3374_v48 = vld [vmem:[%s3759_s26 + $0x28] sm:$0xff] }
 0x1e2   : > { %v1416_v49 = vadd.f32 %v4277_v40, %v1152_v46  ;;  %v1789_v24 = vpop.f32.mrf.mxu2 }
 0x1e4   : > { %v1560_v45 = vadd.f32 %v4338_v55, %v1416_v49 }
 0x1e5   : > { %v4429_v44 = vpop.f32.mrf.mxu1 }
 0x1e6   : > { %v4431_v19 = vadd.f32 %v1782_v27, %v1560_v45 }
 0x1e7   : > { %v1121_v25 = vpop.f32.mrf.mxu3  ;;  %3268 = vmatmul.msk.bf16.gmra.mxu2 %vm384_vm1, %v3373_v3 }
 0x1e8   : > { %v1153_v28 = vadd.f32 %v1121_v25, %v4269_v57  ;;  %v4435_v60 = vpop.f32.mrf.mxu0 }
 0x1ea   : > { %v1417_v33 = vadd.f32 %v4291_v31, %v1153_v28  ;;  %v1792_v1 = vpop.f32.mrf.mxu2  ;;  %v3375_v28 = vld [vmem:[%s3759_s26 + $0x30] sm:$0xff] }
 0x1ec   : > { %1994 = vmatmul.bf16.gmra.mxu3 %v4113_v30  ;;  %v1561_v40 = vadd.f32 %v4349_v12, %v1417_v33 }
 0x1ed   : > { %v1554_v55 = vpop.f32.mrf.mxu1 }
 0x1ee   : > { %v4440_v7 = vadd.f32 %v1784_v18, %v1561_v40 }
 0x1ef   : > { %v1124_v27 = vpop.f32.mrf.mxu3 }
 0x1f0   : > { %v1154_v9 = vadd.f32 %v1124_v27, %v4284_v17  ;;  %v4443_v23 = vpop.f32.mrf.mxu0 }
 0x1f2   : > { %v1418_v5 = vadd.f32 %v4301_v43, %v1154_v9  ;;  %v1794_v57 = vpop.f32.mrf.mxu2 }
 0x1f4   : > { %v1562_v46 = vadd.f32 %v4356_v22, %v1418_v5 }
 0x1f5   : > { %v4467_v40 = vpop.f32.mrf.mxu1 }
 0x1f6   : > { %v4448_v31 = vadd.f32 %v1787_v16, %v1562_v46 }
 0x1f7   : > { %v1126_v30 = vpop.f32.mrf.mxu3  ;;  %3269 = vmatmul.msk.bf16.gmra.mxu2 %vm384_vm1, %v3374_v48 }
 0x1f8   : > { %v1155_v12 = vadd.f32 %v1126_v30, %v4293_v50  ;;  %v4452_v18 = vpop.f32.mrf.mxu0 }
 0x1fa   : > { %v1419_v17 = vadd.f32 %v4314_v15, %v1155_v12  ;;  %v1797_v49 = vpop.f32.mrf.mxu2 }
 0x1fc   : > { %1999 = vmatmul.bf16.gmra.mxu3 %v4142_v61  ;;  %v1563_v43 = vadd.f32 %v4366_v38, %v1419_v17 }
 0x1fd   : > { %v2337_v48 = vpop.f32.mrf.mxu1 }
 0x1fe   : > { %v4457_v3 = vadd.f32 %v1789_v24, %v1563_v43 }
 0x1ff   : > { %v1129_v22 = vpop.f32.mrf.mxu3 }
 0x200   : > { %v1156_v16 = vadd.f32 %v1129_v22, %v4308_v62  ;;  %v4460_v45 = vpop.f32.mrf.mxu0 }
 0x202   : > { %v1420_v25 = vadd.f32 %v4321_v52, %v1156_v16  ;;  %v1799_v50 = vpop.f32.mrf.mxu2  ;;  %v2422_v52 = vld [vmem:[%s3759_s26 + $0x38] sm:$0xf] }
 0x203   : > { %v2461_v5 = vunpack.c.l.b16 %v2422_v52 }
 0x204   : > { %v1564_v33 = vadd.f32 %v4373_v0, %v1420_v25  ;;  %v2269_v0 = vpack.c.b16 %v4340_v34, %v4340_v34 }
 0x205   : > { %v4493_v22 = vpop.f32.mrf.mxu1 }
 0x206   : > { %v4465_v15 = vadd.f32 %v1792_v1, %v1564_v33  ;;  %2369 = vmatmul.bf16.gmra.mxu1 %v2269_v0 }
 0x207   : > { %v1131_v61 = vpop.f32.mrf.mxu3  ;;  %3270 = vmatmul.msk.bf16.gmra.mxu2 %vm384_vm1, %v3375_v28 }
 0x208   : > { %v1157_v38 = vadd.f32 %v1131_v61, %v4316_v37  ;;  %v4471_v24 = vpop.f32.mrf.mxu0 }
 0x20a   : > { %v1421_v62 = vadd.f32 %v4334_v8, %v1157_v38  ;;  %v1802_v55 = vpop.f32.mrf.mxu2 }
 0x20c   : > { %2004 = vmatmul.bf16.gmra.mxu3 %v4170_v14  ;;  %v1565_v1 = vadd.f32 %v4379_v41, %v1421_v62  ;;  %v2469_v14 = vpack.c.b16 %v2461_v5, %v2461_v5 }
 0x20e   : > { %v4479_v27 = vadd.f32 %v1794_v57, %v1565_v1 }
 0x20f   : > { %v1134_v9 = vpop.f32.mrf.mxu3 }
 0x210   : > { %v1158_v37 = vadd.f32 %v1134_v9, %v4328_v42  ;;  %v4482_v46 = vpop.f32.mrf.mxu0 }
 0x212   : > { %v1422_v8 = vadd.f32 %v4342_v59, %v1158_v37  ;;  %v1804_v30 = vpop.f32.mrf.mxu2 }
 0x214   : > { %v1566_v12 = vadd.f32 %v4385_v26, %v1422_v8 }
 0x216   : > { %v4486_v17 = vadd.f32 %v1797_v49, %v1566_v12 }
 0x217   : > { %v1136_v34 = vpop.f32.mrf.mxu3  ;;  %3271 = vmatmul.msk.bf16.gmra.mxu2 %vm384_vm1, %v2469_v14 }
 0x218   : > { %v1159_v41 = vadd.f32 %v1136_v34, %v4336_v51  ;;  %v4490_v57 = vpop.f32.mrf.mxu0 }
 0x21a   : > { %v1423_v42 = vadd.f32 %v4353_v63, %v1159_v41  ;;  %v1807_v43 = vpop.f32.mrf.mxu2  ;;  %v4504_v63 = vpop.f32.mrf.mxu1 }
 0x21c   : > { %2009 = vmatmul.bf16.gmra.mxu3 %v4179_v36  ;;  %v1567_v59 = vadd.f32 %v4397_v10, %v1423_v42 }
 0x21e   : > { %v4497_v16 = vadd.f32 %v1799_v50, %v1567_v59  ;;  %v4543_v59 = vld [vmem:[%s4645_s4] ss:$0 sm:$0xff] }
 0x21f   : > { %v1139_v26 = vpop.f32.mrf.mxu3 }
 0x220   : > { %v1160_v49 = vadd.f32 %v1139_v26, %v4351_v2  ;;  %v4500_v25 = vpop.f32.mrf.mxu0  ;;  %v4652_v2 = vrot.slane %v4167_v11, 3 }
 0x222   : > { %v1424_v51 = vadd.f32 %v4361_v20, %v1160_v49  ;;  %v1809_v28 = vpop.f32.mrf.mxu2 }
 0x224   : > { %v1568_v33 = vadd.f32 %v4407_v54, %v1424_v51  ;;  %v4517_v54 = vpop.f32.mrf.mxu1 }
 0x226   : > { %v4506_v61 = vadd.f32 %v1802_v55, %v1568_v33 }
 0x227   : > { %v1141_v38 = vpop.f32.mrf.mxu3 }
 0x228   : > { %v1161_v36 = vadd.f32 %v1141_v38, %v4359_v29  ;;  %v4509_v10 = vpop.f32.mrf.mxu0  ;;  %v4653_v29 = vld [vmem:[#allocation3_spill] sm:$0xff] }
 0x22a   : > { %v1425_v50 = vadd.f32 %v4370_v21, %v1161_v36  ;;  %v2521_v62 = vpop.f32.mrf.mxu2 }
 0x22c   : > { %2014 = vmatmul.bf16.gmra.mxu3 %v4652_v2  ;;  %v1569_v20 = vadd.f32 %v4419_v47, %v1425_v50  ;;  %v4526_v8 = vpop.f32.mrf.mxu1 }
 0x22e   : > { %v4515_v52 = vadd.f32 %v1804_v30, %v1569_v20 }
 0x22f   : > { %v1144_v0 = vpop.f32.mrf.mxu3 }
 0x230   : > { %v1162_v55 = vadd.f32 %v1144_v0, %v4368_v58  ;;  %v4520_v1 = vpop.f32.mrf.mxu0 }
 0x232   : > { %v1426_v9 = vadd.f32 %v4653_v29, %v1162_v55  ;;  %v2523_v5 = vpop.f32.mrf.mxu2 }
 0x234   : > { %v1570_v21 = vadd.f32 %v4429_v44, %v1426_v9  ;;  %v4532_v42 = vpop.f32.mrf.mxu1  ;;  %v4537_v44 = vld [vmem:[%s4647_s6] ss:$0 sm:$0xff] }
 0x236   : > { %v4524_v37 = vadd.f32 %v1807_v43, %v1570_v21 }
 0x237   : > { %v1146_v11 = vpop.f32.mrf.mxu3 }
 0x238   : > { %v4528_v47 = vpop.f32.mrf.mxu0 }
 0x23a   : > { %v2526_v30 = vpop.f32.mrf.mxu2 }
 0x23b   : > { %v2527_v11 = vadd.f32 %v4537_v44, %v2526_v30 }
 0x23c   : > { %v4549_v36 = vpop.f32.mrf.mxu1 }
 0x23f   : > { %v1980_v14 = vpop.f32.mrf.mxu3 }
 0x240   : > { %v2019_v12 = vadd.f32 %v1980_v14, %v4387_v4  ;;  %v2228_v34 = vpop.f32.mrf.mxu0  ;;  %v2522_v4 = vadd.f32 %v4537_v44, %v2521_v62 }
 0x242   : > { %v2230_v58 = vadd.f32 %v4391_v53, %v2019_v12  ;;  %v2528_v41 = vpop.f32.mrf.mxu2 }
 0x244   : > { %v2374_v43 = vadd.f32 %v4467_v40, %v2230_v58  ;;  %v2524_v40 = vadd.f32 %v4537_v44, %v2523_v5  ;;  %v4563_v21 = vpop.f32.mrf.mxu1 }
 0x246   : > { %v2393_v53 = vadd.f32 %v4543_v59, %v2374_v43 }
 0x247   : > { %v1982_v26 = vpop.f32.mrf.mxu3 }
 0x248   : > { %v2020_v49 = vadd.f32 %v1982_v26, %v4399_v6  ;;  %v2560_v33 = vadd.f32 %v2522_v4, %v2393_v53  ;;  %v2529_v26 = vadd.f32 %v4537_v44, %v2528_v41 }
 0x24a   : > { %v2231_v51 = vadd.f32 %v4402_v39, %v2020_v49  ;;  %v2531_v28 = vpop.f32.mrf.mxu2  ;;  %v2590_v20 = vmul.f32 0.01, %v2560_v33  ;;  %vm2575_vm1 = vcmp.ge.f32.partialorder %v2560_v33, 0.0 }
 0x24c   : > { %v2375_v38 = vadd.f32 %v2337_v48, %v2231_v51  ;;  %v2605_v29 = vsel %vm2575_vm1, %v2560_v33, %v2590_v20  ;;  %v4574_v51 = vpop.f32.mrf.mxu1 }
 0x24e   : > { %v2394_v50 = vadd.f32 %v4543_v59, %v2375_v38 }
 0x24f   : > { %v1985_v2 = vpop.f32.mrf.mxu3 }
 0x250   : > { %v2561_v0 = vadd.f32 %v2524_v40, %v2394_v50  ;;  %v2021_v62 = vadd.f32 %v1985_v2, %v4409_v35  ;;  %v2532_v2 = vadd.f32 %v4537_v44, %v2531_v28 }
 0x252   : > { %vm2576_vm6 = vcmp.ge.f32.partialorder %v2561_v0, 0.0  ;;  %v2591_v6 = vmul.f32 0.01, %v2561_v0  ;;  %v2232_v39 = vadd.f32 %v4413_v56, %v2021_v62  ;;  %v2533_v55 = vpop.f32.mrf.mxu2 }
 0x254   : > { %v2606_v48 = vsel %vm2576_vm6, %v2561_v0, %v2591_v6  ;;  %v2376_v9 = vadd.f32 %v4493_v22, %v2232_v39  ;;  %v4583_v6 = vpop.f32.mrf.mxu1 }
 0x255   : > { %v3476_v5 = vpack.c.bf16 %v2606_v48, %v2605_v29  ;;  %v2534_v29 = vadd.f32 %v4537_v44, %v2533_v55 }
 0x256   : > { %v2395_v56 = vadd.f32 %v4543_v59, %v2376_v9 }
 0x257   : > { %3477 = vst [vmem:[%s4560_s23] sm:$0xff] %v3476_v5   ;;  %v1987_v35 = vpop.f32.mrf.mxu3 }
 0x258   : > { %v2022_v14 = vadd.f32 %v1987_v35, %v4421_v32  ;;  %v2562_v58 = vadd.f32 %v2527_v11, %v2395_v56 }
 0x25a   : > { %v2233_v12 = vadd.f32 %v4424_v13, %v2022_v14  ;;  %v2536_v34 = vpop.f32.mrf.mxu2  ;;  %v2592_v53 = vmul.f32 0.01, %v2562_v58  ;;  %vm2577_vm7 = vcmp.ge.f32.partialorder %v2562_v58, 0.0 }
 0x25c   : > { %v2377_v43 = vadd.f32 %v4504_v63, %v2233_v12  ;;  %v2607_v38 = vsel %vm2577_vm7, %v2562_v58, %v2592_v53  ;;  %v2362_v14 = vpop.f32.mrf.mxu1  ;;  %v2537_v58 = vadd.f32 %v4537_v44, %v2536_v34 }
 0x25e   : > { %v2396_v22 = vadd.f32 %v4543_v59, %v2377_v43 }
 0x25f   : > { %v1990_v4 = vpop.f32.mrf.mxu3 }
 0x260   : > { %v2563_v49 = vadd.f32 %v2529_v26, %v2396_v22  ;;  %v2023_v30 = vadd.f32 %v1990_v4, %v4431_v19 }
 0x262   : > { %vm2578_vm8 = vcmp.ge.f32.partialorder %v2563_v49, 0.0  ;;  %v2593_v32 = vmul.f32 0.01, %v2563_v49  ;;  %v2234_v13 = vadd.f32 %v4435_v60, %v2023_v30  ;;  %v2538_v33 = vpop.f32.mrf.mxu2 }
 0x263   : > { %v2539_v53 = vadd.f32 %v4537_v44, %v2538_v33 }
 0x264   : > { %v2608_v63 = vsel %vm2578_vm8, %v2563_v49, %v2593_v32  ;;  %v2378_v41 = vadd.f32 %v4517_v54, %v2234_v13  ;;  %v4599_v49 = vpop.f32.mrf.mxu1 }
 0x265   : > { %v3481_v40 = vpack.c.bf16 %v2608_v63, %v2607_v38 }
 0x266   : > { %v2397_v20 = vadd.f32 %v4543_v59, %v2378_v41 }
 0x267   : > { %3532 = vst [vmem:[%s4560_s23 + $0x8] sm:$0xff] %v3481_v40   ;;  %v1992_v50 = vpop.f32.mrf.mxu3 }
 0x268   : > { %v2024_v19 = vadd.f32 %v1992_v50, %v4440_v7  ;;  %v2564_v60 = vadd.f32 %v2532_v2, %v2397_v20 }
 0x26a   : > { %v2235_v0 = vadd.f32 %v4443_v23, %v2024_v19  ;;  %v2541_v62 = vpop.f32.mrf.mxu2  ;;  %v2594_v9 = vmul.f32 0.01, %v2564_v60  ;;  %vm2579_vm9 = vcmp.ge.f32.partialorder %v2564_v60, 0.0 }
 0x26b   : > { %v2542_v50 = vadd.f32 %v4537_v44, %v2541_v62 }
 0x26c   : > { %v2379_v39 = vadd.f32 %v4526_v8, %v2235_v0  ;;  %v2609_v11 = vsel %vm2579_vm9, %v2564_v60, %v2594_v9 }
 0x26e   : > { %v2398_v54 = vadd.f32 %v4543_v59, %v2379_v39 }
 0x26f   : > { %v1995_v48 = vpop.f32.mrf.mxu3 }
 0x270   : > { %v2565_v28 = vadd.f32 %v2534_v29, %v2398_v54  ;;  %v2025_v5 = vadd.f32 %v1995_v48, %v4448_v31 }
 0x272   : > { %vm2580_vm10 = vcmp.ge.f32.partialorder %v2565_v28, 0.0  ;;  %v2595_v7 = vmul.f32 0.01, %v2565_v28  ;;  %v2236_v23 = vadd.f32 %v4452_v18, %v2025_v5  ;;  %v2543_v35 = vpop.f32.mrf.mxu2 }
 0x273   : > { %v2544_v39 = vadd.f32 %v4537_v44, %v2543_v35 }
 0x274   : > { %v2610_v56 = vsel %vm2580_vm10, %v2565_v28, %v2595_v7  ;;  %v2380_v8 = vadd.f32 %v4532_v42, %v2236_v23 }
 0x275   : > { %v3486_v55 = vpack.c.bf16 %v2610_v56, %v2609_v11 }
 0x276   : > { %v2399_v43 = vadd.f32 %v4543_v59, %v2380_v8 }
 0x277   : > { %3533 = vst [vmem:[%s4560_s23 + $0x10] sm:$0xff] %v3486_v55   ;;  %v1997_v12 = vpop.f32.mrf.mxu3 }
 0x278   : > { %v2026_v31 = vadd.f32 %v1997_v12, %v4457_v3  ;;  %v2566_v4 = vadd.f32 %v2537_v58, %v2399_v43 }
 0x27a   : > { %v2237_v26 = vadd.f32 %v4460_v45, %v2026_v31  ;;  %v2546_v22 = vpop.f32.mrf.mxu2  ;;  %v2596_v32 = vmul.f32 0.01, %v2566_v4  ;;  %vm2581_vm11 = vcmp.ge.f32.partialorder %v2566_v4, 0.0 }
 0x27b   : > { %v2547_v11 = vadd.f32 %v4537_v44, %v2546_v22 }
 0x27c   : > { %v2381_v18 = vadd.f32 %v4549_v36, %v2237_v26  ;;  %v2611_v63 = vsel %vm2581_vm11, %v2566_v4, %v2596_v32 }
 0x27e   : > { %v2400_v42 = vadd.f32 %v4543_v59, %v2381_v18 }
 0x27f   : > { %v2000_v30 = vpop.f32.mrf.mxu3 }
 0x280   : > { %v2567_v34 = vadd.f32 %v2539_v53, %v2400_v42  ;;  %v2027_v13 = vadd.f32 %v2000_v30, %v4465_v15  ;;  %v2367_v15 = vpop.f32.mrf.mxu1 }
 0x282   : > { %vm2582_vm12 = vcmp.ge.f32.partialorder %v2567_v34, 0.0  ;;  %v2597_v3 = vmul.f32 0.01, %v2567_v34  ;;  %v2238_v45 = vadd.f32 %v4471_v24, %v2027_v13  ;;  %v2548_v38 = vpop.f32.mrf.mxu2 }
 0x283   : > { %v2549_v43 = vadd.f32 %v4537_v44, %v2548_v38 }
 0x284   : > { %v2612_v36 = vsel %vm2582_vm12, %v2567_v34, %v2597_v3  ;;  %v2382_v33 = vadd.f32 %v4563_v21, %v2238_v45 }
 0x285   : > { %v3491_v41 = vpack.c.bf16 %v2612_v36, %v2611_v63 }
 0x286   : > { %v2401_v2 = vadd.f32 %v4543_v59, %v2382_v33 }
 0x287   : > { %3534 = vst [vmem:[%s4560_s23 + $0x18] sm:$0xff] %v3491_v41   ;;  %v2002_v40 = vpop.f32.mrf.mxu3 }
 0x288   : > { %v2028_v20 = vadd.f32 %v2002_v40, %v4479_v27  ;;  %v2568_v60 = vadd.f32 %v2542_v50, %v2401_v2  ;;  %v2370_v9 = vpop.f32.mrf.mxu1 }
 0x28a   : > { %v2239_v19 = vadd.f32 %v4482_v46, %v2028_v20  ;;  %v2551_v0 = vpop.f32.mrf.mxu2  ;;  %v2598_v54 = vmul.f32 0.01, %v2568_v60  ;;  %vm2583_vm13 = vcmp.ge.f32.partialorder %v2568_v60, 0.0 }
 0x28b   : > { %v2552_v34 = vadd.f32 %v4537_v44, %v2551_v0 }
 0x28c   : > { %v2383_v24 = vadd.f32 %v4574_v51, %v2239_v19  ;;  %v2613_v5 = vsel %vm2583_vm13, %v2568_v60, %v2598_v54 }
 0x28e   : > { %v2402_v21 = vadd.f32 %v4543_v59, %v2383_v24 }
 0x28f   : > { %v2005_v29 = vpop.f32.mrf.mxu3 }
 0x290   : > { %v2569_v48 = vadd.f32 %v2544_v39, %v2402_v21  ;;  %v2029_v62 = vadd.f32 %v2005_v29, %v4486_v17  ;;  %v2372_v8 = vpop.f32.mrf.mxu1 }
 0x292   : > { %vm2584_vm14 = vcmp.ge.f32.partialorder %v2569_v48, 0.0  ;;  %v2599_v27 = vmul.f32 0.01, %v2569_v48  ;;  %v2240_v46 = vadd.f32 %v4490_v57, %v2029_v62  ;;  %v2553_v28 = vpop.f32.mrf.mxu2 }
 0x294   : > { %v2614_v7 = vsel %vm2584_vm14, %v2569_v48, %v2599_v27  ;;  %v2384_v51 = vadd.f32 %v4583_v6, %v2240_v46 }
 0x295   : > { %v3496_v23 = vpack.c.bf16 %v2614_v7, %v2613_v5 }
 0x296   : > { %v2403_v56 = vadd.f32 %v4543_v59, %v2384_v51 }
 0x297   : > { %3535 = vst [vmem:[%s4560_s23 + $0x20] sm:$0xff] %v3496_v23   ;;  %v2007_v35 = vpop.f32.mrf.mxu3 }
 0x298   : > { %v2030_v17 = vadd.f32 %v2007_v35, %v4497_v16  ;;  %v2570_v58 = vadd.f32 %v2547_v11, %v2403_v56 }
 0x29a   : > { %v2241_v55 = vadd.f32 %v4500_v25, %v2030_v17  ;;  %v2556_v12 = vpop.f32.mrf.mxu2  ;;  %v2600_v26 = vmul.f32 0.01, %v2570_v58  ;;  %vm2585_vm15 = vcmp.ge.f32.partialorder %v2570_v58, 0.0 }
 0x29b   : > { %v2557_v2 = vadd.f32 %v4537_v44, %v2556_v12 }
 0x29c   : > { %v2385_v57 = vadd.f32 %v2362_v14, %v2241_v55  ;;  %v2615_v25 = vsel %vm2585_vm15, %v2570_v58, %v2600_v26 }
 0x29e   : > { %v2404_v6 = vadd.f32 %v4543_v59, %v2385_v57 }
 0x29f   : > { %v2010_v31 = vpop.f32.mrf.mxu3 }
 0x2a0   : > { %v2571_v4 = vadd.f32 %v2549_v43, %v2404_v6  ;;  %v2031_v22 = vadd.f32 %v2010_v31, %v4506_v61 }
 0x2a2   : > { %vm2586_vm2 = vcmp.ge.f32.partialorder %v2571_v4, 0.0  ;;  %v2601_v18 = vmul.f32 0.01, %v2571_v4  ;;  %v2242_v16 = vadd.f32 %v4509_v10, %v2031_v22  ;;  %v2558_v53 = vpop.f32.mrf.mxu2  ;;  %v2554_v10 = vadd.f32 %v4537_v44, %v2553_v28 }
 0x2a4   : > { %v2616_v42 = vsel %vm2586_vm2, %v2571_v4, %v2601_v18  ;;  %v2386_v14 = vadd.f32 %v4599_v49, %v2242_v16 }
 0x2a5   : > { %v3501_v30 = vpack.c.bf16 %v2616_v42, %v2615_v25 }
 0x2a6   : > { %v2405_v13 = vadd.f32 %v4543_v59, %v2386_v14 }
 0x2a7   : > { %3536 = vst [vmem:[%s4560_s23 + $0x28] sm:$0xff] %v3501_v30   ;;  %v2012_v32 = vpop.f32.mrf.mxu3 }
 0x2a8   : > { %v2032_v3 = vadd.f32 %v2012_v32, %v4515_v52  ;;  %v2572_v45 = vadd.f32 %v2552_v34, %v2405_v13 }
 0x2aa   : > { %v2243_v61 = vadd.f32 %v4520_v1, %v2032_v3  ;;  %v2602_v49 = vmul.f32 0.01, %v2572_v45  ;;  %vm2587_vm3 = vcmp.ge.f32.partialorder %v2572_v45, 0.0 }
 0x2ac   : > { %v2387_v38 = vadd.f32 %v2367_v15, %v2243_v61  ;;  %v2617_v50 = vsel %vm2587_vm3, %v2572_v45, %v2602_v49 }
 0x2ae   : > { %v2406_v63 = vadd.f32 %v4543_v59, %v2387_v38 }
 0x2af   : > { %v2015_v36 = vpop.f32.mrf.mxu3 }
 0x2b0   : > { %v2573_v33 = vadd.f32 %v2554_v10, %v2406_v63  ;;  %v2033_v41 = vadd.f32 %v2015_v36, %v4524_v37 }
 0x2b2   : > { %vm2588_vm4 = vcmp.ge.f32.partialorder %v2573_v33, 0.0  ;;  %v2603_v40 = vmul.f32 0.01, %v2573_v33  ;;  %v2244_v52 = vadd.f32 %v4528_v47, %v2033_v41 }
 0x2b4   : > { %v2618_v1 = vsel %vm2588_vm4, %v2573_v33, %v2603_v40  ;;  %v2388_v20 = vadd.f32 %v2370_v9, %v2244_v52 }
 0x2b5   : > { %v3506_v15 = vpack.c.bf16 %v2618_v1, %v2617_v50 }
 0x2b6   : > { %v2407_v19 = vadd.f32 %v4543_v59, %v2388_v20 }
 0x2b7   : > { %3537 = vst [vmem:[%s4560_s23 + $0x30] sm:$0xff] %v3506_v15   ;;  %v2017_v0 = vpop.f32.mrf.mxu3 }
 0x2b8   : > { %v2574_v60 = vadd.f32 %v2557_v2, %v2407_v19 }
 0x2ba   : > { %vm2589_vm5 = vcmp.ge.f32.partialorder %v2574_v60, 0.0  ;;  %v2604_v24 = vmul.f32 0.01, %v2574_v60 }
 0x2bc   : > { %v2619_v37 = vsel %vm2589_vm5, %v2574_v60, %v2604_v24 }
 0x2bd   : > { %v2634_v39 = vpack.c.bf16 %v2619_v37, %v2619_v37 }
 0x2bf   : > { %2649 = vst [vmem:[%s4560_s23 + $0x38] sm:$0xf] %v2634_v39 }
 0x2c0 PF: > { %s18_s27 = sadd.s32 1, %s3670_s27  }
 0x2c1   : > { %p15_p4 = scmp.ge.s32.totalorder %s18_s27, 4  }
 0x2c3   :  { %17 = sbr.rel (!%p15_p4) target bundleno = 1 (0x1), region = 90 }

</bundles_post_ra>
